<compile_context>
chip_gen: v7x
topology: tpu7x:2x2x1
jax: 0.10.0
libtpu: 0.0.40
codegen_flags: <defaults>
</compile_context>

<pallas_src>
import jax
import jax.numpy as jnp
from jax.experimental import pallas as pl
from jax.experimental.pallas import tpu as pltpu

LANE = 128
_VMEM_LIMIT = 48 << 20          # headroom below v7x's 64 MiB physical VMEM
_FUSED_ADJ_BYTES = 8 << 20      # bf16 adjacency footprint gate for fused path


# ---------------------------------------------------------------------------
# Pallas kernels
# ---------------------------------------------------------------------------
def _softplus(h):
    # numerically-stable softplus matching torch.nn.Softplus (beta=1, thr=20)
    return jnp.where(h > 20.0, h, jnp.log1p(jnp.exp(jnp.minimum(h, 20.0))))


def _fused_gcn_kernel(adj_ref, xw1_ref, b1_ref, w2f_ref, b2f_ref, o_ref):
    # whole forward in one kernel; everything VMEM-resident, adjacency read once
    adj = adj_ref[...]                                             # bf16 (Np,Np)
    h = jnp.dot(adj, xw1_ref[...], preferred_element_type=jnp.float32)
    h = _softplus(h + b1_ref[...])                                 # conv1 + act
    hw = jnp.dot(h.astype(jnp.bfloat16), w2f_ref[...],            # H1 @ (W2 Wf)
                 preferred_element_type=jnp.float32)
    logits = jnp.dot(adj, hw.astype(jnp.bfloat16),                 # conv2 agg
                     preferred_element_type=jnp.float32) + b2f_ref[...]
    m = jnp.max(logits, axis=-1, keepdims=True)
    e = jnp.exp(logits - m)                                        # padded cols -> 0
    s = jnp.sum(e, axis=-1, keepdims=True)
    o_ref[...] = (e * pl.reciprocal(s, approx=True)).astype(o_ref.dtype)


def _agg1_fused_kernel(adj_ref, xw1_ref, b1_ref, w2f_ref, hw_ref):
    # row-panel: hw = softplus(A_hat[tile] @ (X W1) + b1) @ (W2 Wf)
    h = jnp.dot(adj_ref[...], xw1_ref[...], preferred_element_type=jnp.float32)
    h = _softplus(h + b1_ref[...])
    hw_ref[...] = jnp.dot(h.astype(jnp.bfloat16), w2f_ref[...],
                          preferred_element_type=jnp.float32).astype(hw_ref.dtype)


def _agg2_softmax_kernel(adj_ref, hw_ref, b2f_ref, o_ref):
    # row-panel: softmax(A_hat[tile] @ hw + fused bias); padded cols masked by -1e9
    logits = jnp.dot(adj_ref[...], hw_ref[...],
                     preferred_element_type=jnp.float32) + b2f_ref[...]
    m = jnp.max(logits, axis=-1, keepdims=True)
    e = jnp.exp(logits - m)
    s = jnp.sum(e, axis=-1, keepdims=True)
    o_ref[...] = (e * pl.reciprocal(s, approx=True)).astype(o_ref.dtype)


# ---------------------------------------------------------------------------
# Forward pass
# ---------------------------------------------------------------------------
def _round_up(n, m):
    return ((n + m - 1) // m) * m


def _pad2(a, shape, fill=0.0):
    out = jnp.full(shape, fill, a.dtype)
    return out.at[: a.shape[0], : a.shape[1]].set(a)


def gcn_forward(adj_norm, x, w1, b1, w2, b2, wf, bf, *, tm=256):
    N = x.shape[0]
    nhid = w1.shape[1]
    nout = wf.shape[1]

    nhid_p = _round_up(nhid, LANE)
    nout_p = _round_up(nout, LANE)

    # ---- exact algebraic folds done in the wrapper (tiny, XLA handles them) --
    w2f = jnp.dot(w2, wf)                      # (nhid, nout): conv2 weight into fc
    b2f = jnp.dot(b2, wf) + bf                 # (1, nout)
    xw1 = jnp.dot(x, w1)                       # (N, nhid): dense feature transform

    # ---- choose fused (single-kernel, adjacency VMEM-resident) vs row-tiled --
    Np_f = _round_up(N, LANE)
    use_fused = (Np_f * Np_f * 2) <= _FUSED_ADJ_BYTES
    Np = Np_f if use_fused else _round_up(N, tm)

    # ---- lane-dense padding, bf16 MXU operands -------------------------------
    adj_p = _pad2(adj_norm, (Np, Np)).astype(jnp.bfloat16)
    xw1_p = _pad2(xw1, (Np, nhid_p)).astype(jnp.bfloat16)
    b1_p = _pad2(b1, (1, nhid_p)).astype(jnp.float32)
    w2f_p = _pad2(w2f, (nhid_p, nout_p)).astype(jnp.bfloat16)
    # padded class columns get a huge negative fused bias -> softmax mask for free
    b2f_p = jnp.full((1, nout_p), -1e9, jnp.float32).at[:, :nout].set(b2f)

    if use_fused:
        out_p = pl.pallas_call(
            _fused_gcn_kernel,
            out_shape=jax.ShapeDtypeStruct((Np, nout_p), jnp.float32),
            grid=(1,),
            in_specs=[
                pl.BlockSpec((Np, Np), lambda i: (0, 0)),
                pl.BlockSpec((Np, nhid_p), lambda i: (0, 0)),
                pl.BlockSpec((1, nhid_p), lambda i: (0, 0)),
                pl.BlockSpec((nhid_p, nout_p), lambda i: (0, 0)),
                pl.BlockSpec((1, nout_p), lambda i: (0, 0)),
            ],
            out_specs=pl.BlockSpec((Np, nout_p), lambda i: (0, 0)),
        )(adj_p, xw1_p, b1_p, w2f_p, b2f_p)
    else:
        # Row-tiled path for large graphs: two kernels, adjacency streamed as
        # (tm, Np) panels.  tm=256 fills the 256-wide MXU on v6e/v7x; keep the
        # grid even where possible so v7x's two TensorCores both get work.
        grid = (Np // tm,)
        cp = pltpu.CompilerParams(dimension_semantics=("parallel",),
                                  vmem_limit_bytes=_VMEM_LIMIT)
        hw = pl.pallas_call(
            _agg1_fused_kernel,
            out_shape=jax.ShapeDtypeStruct((Np, nout_p), jnp.bfloat16),
            grid=grid,
            in_specs=[
                pl.BlockSpec((tm, Np), lambda i: (i, 0)),       # streamed panel
                pl.BlockSpec((Np, nhid_p), lambda i: (0, 0)),   # resident
                pl.BlockSpec((1, nhid_p), lambda i: (0, 0)),    # resident
                pl.BlockSpec((nhid_p, nout_p), lambda i: (0, 0)),
            ],
            out_specs=pl.BlockSpec((tm, nout_p), lambda i: (i, 0)),
            compiler_params=cp,
        )(adj_p, xw1_p, b1_p, w2f_p)

        out_p = pl.pallas_call(
            _agg2_softmax_kernel,
            out_shape=jax.ShapeDtypeStruct((Np, nout_p), jnp.float32),
            grid=grid,
            in_specs=[
                pl.BlockSpec((tm, Np), lambda i: (i, 0)),       # streamed panel
                pl.BlockSpec((Np, nout_p), lambda i: (0, 0)),   # resident
                pl.BlockSpec((1, nout_p), lambda i: (0, 0)),
            ],
            out_specs=pl.BlockSpec((tm, nout_p), lambda i: (i, 0)),
            compiler_params=cp,
        )(adj_p, hw, b2f_p)

    return out_p[:N, :nout]


# ---------------------------------------------------------------------------
# Glue: dense GCN normalization  A_hat = D^-1/2 (A + I) D^-1/2
# ---------------------------------------------------------------------------
def normalized_adjacency(edge_index, num_nodes):
    # TODO(synk): PyG's gcn_norm scatter-adds duplicate edges / pre-existing
    # self-loops; this dense builder adds edges and inserts missing self-loops.
    src, dst = edge_index[0], edge_index[1]
    adj = jnp.zeros((num_nodes, num_nodes), jnp.float32)
    adj = adj.at[src, dst].add(1.0)
    diag = jnp.diagonal(adj)
    adj = adj.at[jnp.arange(num_nodes), jnp.arange(num_nodes)].set(
        jnp.where(diag > 0, diag, 1.0))
    deg = jnp.sum(adj, axis=1)
    dinv = jnp.where(deg > 0, 1.0 / jnp.sqrt(deg), 0.0)
    return dinv[:, None] * adj * dinv[None, :]


def glorot(key, shape):
    fan_in, fan_out = shape
    limit = jnp.sqrt(6.0 / (fan_in + fan_out))
    return jax.random.uniform(key, shape, jnp.float32, -limit, limit)


def gcn_reference(adj, x, w1, b1, w2, b2, wf, bf):
    h = jnp.dot(adj, jnp.dot(x, w1)) + b1
    h = jnp.where(h > 20.0, h, jnp.log1p(jnp.exp(jnp.minimum(h, 20.0))))
    h = jnp.dot(adj, jnp.dot(h, w2)) + b2
    logits = jnp.dot(h, wf) + bf
    return jax.nn.softmax(logits, axis=1)


if __name__ == "__main__":
    # small, deterministic problem: nfeat=16, nhid=32, nclass=4 -> fc out = 3
    N, nfeat, nhid, nclass = 256, 16, 32, 4
    nout = nclass - 1

    key = jax.random.PRNGKey(0)
    kx, ke, k1, k2, kf = jax.random.split(key, 5)

    # node features
    x = jax.random.normal(kx, (N, nfeat), jnp.float32)

    # deterministic undirected random edges
    n_edges = 512
    s = jax.random.randint(ke, (n_edges,), 0, N)
    d = jax.random.randint(jax.random.fold_in(ke, 1), (n_edges,), 0, N)
    edge_index = jnp.stack([jnp.concatenate([s, d]), jnp.concatenate([d, s])])

    adj_norm = normalized_adjacency(edge_index, N)

    # deterministic parameter init (glorot weights, zero biases; shapes match
    # GCNConv(nfeat,nhid), GCNConv(nhid,nhid), Linear(nhid, nclass-1))
    w1 = glorot(k1, (nfeat, nhid))
    b1 = jnp.zeros((1, nhid), jnp.float32)
    w2 = glorot(k2, (nhid, nhid))
    b2 = jnp.zeros((1, nhid), jnp.float32)
    wf = glorot(kf, (nhid, nout))
    bf = jnp.zeros((1, nout), jnp.float32)

    # TODO(synk): Dropout is eval-mode identity; training-mode dropout would need
    # pltpu.prng_seed / prng_random_bits inside the kernel.
    out = gcn_forward(adj_norm, x, w1, b1, w2, b2, wf, bf)
    jax.block_until_ready(out)

    assert out.shape == (N, nout)
    # rows of a softmax sum to 1 (approx reciprocal + bf16 matmuls -> loose tol)
    assert bool(jnp.allclose(jnp.sum(out, axis=1), 1.0, atol=2e-3))
    # loose agreement with the pure-f32 reference (bf16 MXU + fused W2*Wf)
    ref = gcn_reference(adj_norm, x, w1, b1, w2, b2, wf, bf)
    assert bool(jnp.max(jnp.abs(out - ref)) < 5e-2)
    print("KERNEL_OK")
</pallas_src>

<mosaic_0001>
module attributes {stable_mosaic.version = 11 : i64} {
  func.func @_fused_gcn_kernel(%arg0: i32, %arg1: memref<256x256xbf16, #tpu.memory_space<vmem>>, %arg2: memref<256x128xbf16, #tpu.memory_space<vmem>>, %arg3: memref<1x128xf32, #tpu.memory_space<vmem>>, %arg4: memref<128x128xbf16, #tpu.memory_space<vmem>>, %arg5: memref<1x128xf32, #tpu.memory_space<vmem>>, %arg6: memref<256x128xf32, #tpu.memory_space<vmem>>) attributes {dimension_semantics = [#tpu.dimension_semantics<arbitrary>], iteration_bounds = array<i64: 1>, scalar_prefetch = 0 : i64, scratch_operands = 0 : i64, tpu.core_type = #tpu.core_type<tc>, window_params = [{pipeline_mode = #tpu.pipeline_mode<synchronous>, transform_indices = @transform_0, window_bounds = array<i64: 256, 256>}, {pipeline_mode = #tpu.pipeline_mode<synchronous>, transform_indices = @transform_1, window_bounds = array<i64: 256, 128>}, {pipeline_mode = #tpu.pipeline_mode<synchronous>, transform_indices = @transform_2, window_bounds = array<i64: 1, 128>}, {pipeline_mode = #tpu.pipeline_mode<synchronous>, transform_indices = @transform_3, window_bounds = array<i64: 128, 128>}, {pipeline_mode = #tpu.pipeline_mode<synchronous>, transform_indices = @transform_4, window_bounds = array<i64: 1, 128>}, {pipeline_mode = #tpu.pipeline_mode<synchronous>, transform_indices = @transform_5, window_bounds = array<i64: 256, 128>}]} {
    %c0 = arith.constant 0 : index
    %c0_0 = arith.constant 0 : index
    %0 = vector.load %arg1[%c0, %c0_0] : memref<256x256xbf16, #tpu.memory_space<vmem>>, vector<256x256xbf16>
    %c0_1 = arith.constant 0 : index
    %c0_2 = arith.constant 0 : index
    %1 = vector.load %arg2[%c0_1, %c0_2] : memref<256x128xbf16, #tpu.memory_space<vmem>>, vector<256x128xbf16>
    %cst = arith.constant dense<0.000000e+00> : vector<256x128xf32>
    %2 = tpu.matmul %0, %1, %cst {dimension_numbers = #tpu.dot_dimension_numbers<[1], [0], [0], [1], [0, 0, 1, 1], [], []>} : vector<256x256xbf16>, vector<256x128xbf16>, vector<256x128xf32> -> vector<256x128xf32>
    %c0_3 = arith.constant 0 : index
    %c0_4 = arith.constant 0 : index
    %3 = vector.load %arg3[%c0_3, %c0_4] : memref<1x128xf32, #tpu.memory_space<vmem>>, vector<1x128xf32>
    %4 = vector.broadcast %3 : vector<1x128xf32> to vector<256x128xf32>
    %5 = arith.addf %2, %4 : vector<256x128xf32>
    %cst_5 = arith.constant 2.000000e+01 : f32
    %6 = vector.broadcast %cst_5 : f32 to vector<256x128xf32>
    %7 = arith.cmpf ogt, %5, %6 : vector<256x128xf32>
    %cst_6 = arith.constant 2.000000e+01 : f32
    %8 = vector.broadcast %cst_6 : f32 to vector<256x128xf32>
    %9 = arith.minimumf %5, %8 : vector<256x128xf32>
    %10 = math.exp %9 : vector<256x128xf32>
    %11 = math.log1p %10 : vector<256x128xf32>
    %12 = arith.select %7, %5, %11 : vector<256x128xi1>, vector<256x128xf32>
    %13 = arith.truncf %12 : vector<256x128xf32> to vector<256x128xbf16>
    %c0_7 = arith.constant 0 : index
    %c0_8 = arith.constant 0 : index
    %14 = vector.load %arg4[%c0_7, %c0_8] : memref<128x128xbf16, #tpu.memory_space<vmem>>, vector<128x128xbf16>
    %cst_9 = arith.constant dense<0.000000e+00> : vector<256x128xf32>
    %15 = tpu.matmul %13, %14, %cst_9 {dimension_numbers = #tpu.dot_dimension_numbers<[1], [0], [0], [1], [0, 0, 1, 1], [], []>} : vector<256x128xbf16>, vector<128x128xbf16>, vector<256x128xf32> -> vector<256x128xf32>
    %16 = arith.truncf %15 : vector<256x128xf32> to vector<256x128xbf16>
    %cst_10 = arith.constant dense<0.000000e+00> : vector<256x128xf32>
    %17 = tpu.matmul %0, %16, %cst_10 {dimension_numbers = #tpu.dot_dimension_numbers<[1], [0], [0], [1], [0, 0, 1, 1], [], []>} : vector<256x256xbf16>, vector<256x128xbf16>, vector<256x128xf32> -> vector<256x128xf32>
    %c0_11 = arith.constant 0 : index
    %c0_12 = arith.constant 0 : index
    %18 = vector.load %arg5[%c0_11, %c0_12] : memref<1x128xf32, #tpu.memory_space<vmem>>, vector<1x128xf32>
    %19 = vector.broadcast %18 : vector<1x128xf32> to vector<256x128xf32>
    %20 = arith.addf %17, %19 : vector<256x128xf32>
    %cst_13 = arith.constant dense<0xFF800000> : vector<256xf32>
    %21 = vector.multi_reduction <maximumf>, %20, %cst_13 [1] : vector<256x128xf32> to vector<256xf32>
    %22 = vector.shape_cast %21 : vector<256xf32> to vector<256x1xf32>
    %23 = vector.broadcast %22 : vector<256x1xf32> to vector<256x128xf32>
    %24 = arith.subf %20, %23 : vector<256x128xf32>
    %25 = math.exp %24 : vector<256x128xf32>
    %cst_14 = arith.constant dense<0.000000e+00> : vector<256xf32>
    %26 = vector.multi_reduction <add>, %25, %cst_14 [1] : vector<256x128xf32> to vector<256xf32>
    %27 = vector.shape_cast %26 : vector<256xf32> to vector<256x1xf32>
    %28 = tpu.reciprocal %27 {approx = true} : vector<256x1xf32> -> vector<256x1xf32>
    %29 = vector.broadcast %28 : vector<256x1xf32> to vector<256x128xf32>
    %30 = arith.mulf %25, %29 : vector<256x128xf32>
    %c0_15 = arith.constant 0 : index
    %c0_16 = arith.constant 0 : index
    %31 = vector.load %arg6[%c0_15, %c0_16] : memref<256x128xf32, #tpu.memory_space<vmem>>, vector<256x128xf32>
    tpu.vector_store %arg6[%c0_15, %c0_16], %30 {strides = array<i32>} : memref<256x128xf32, #tpu.memory_space<vmem>>, vector<256x128xf32>,
    return
  }
  func.func @transform_0(%arg0: i32) -> (i32, i32) {
    %c0_i32 = arith.constant 0 : i32
    %c0_i32_0 = arith.constant 0 : i32
    %c0_i32_1 = arith.constant 0 : i32
    return %c0_i32, %c0_i32_0 : i32, i32
  }
  func.func @transform_1(%arg0: i32) -> (i32, i32) {
    %c0_i32 = arith.constant 0 : i32
    %c0_i32_0 = arith.constant 0 : i32
    %c0_i32_1 = arith.constant 0 : i32
    return %c0_i32, %c0_i32_0 : i32, i32
  }
  func.func @transform_2(%arg0: i32) -> (i32, i32) {
    %c0_i32 = arith.constant 0 : i32
    %c0_i32_0 = arith.constant 0 : i32
    %c0_i32_1 = arith.constant 0 : i32
    return %c0_i32, %c0_i32_0 : i32, i32
  }
  func.func @transform_3(%arg0: i32) -> (i32, i32) {
    %c0_i32 = arith.constant 0 : i32
    %c0_i32_0 = arith.constant 0 : i32
    %c0_i32_1 = arith.constant 0 : i32
    return %c0_i32, %c0_i32_0 : i32, i32
  }
  func.func @transform_4(%arg0: i32) -> (i32, i32) {
    %c0_i32 = arith.constant 0 : i32
    %c0_i32_0 = arith.constant 0 : i32
    %c0_i32_1 = arith.constant 0 : i32
    return %c0_i32, %c0_i32_0 : i32, i32
  }
  func.func @transform_5(%arg0: i32) -> (i32, i32) {
    %c0_i32 = arith.constant 0 : i32
    %c0_i32_0 = arith.constant 0 : i32
    %c0_i32_1 = arith.constant 0 : i32
    return %c0_i32, %c0_i32_0 : i32, i32
  }
}

</mosaic_0001>

<bundles_post_ra>
// kernel: tpu_custom_call.1
= control target key start
LH: loop header
LB: loop body
LE: loop exit
PB: predicated region body
PF: predicated region fallthrough
CT: control target
= control target key end

     0   :  { %10 = vsyncpa [#allocation3], 0  ;;  %s3530_s0 = inlined_call_operand.hbm [shape: bf16[256,256], index: 0, kind: input, shape index: {}]   ;;  %s3531_s1 = inlined_call_operand.hbm [shape: bf16[256,128], index: 1, kind: input, shape index: {}]   ;;  %s3532_s2 = inlined_call_operand.vmem [shape: f32[1,128], index: 2, kind: input, shape index: {}]   ;;  %s3533_s3 = inlined_call_operand.hbm [shape: bf16[128,128], index: 3, kind: input, shape index: {}]   ;;  %s3534_s4 = inlined_call_operand.vmem [shape: f32[1,128], index: 4, kind: input, shape index: {}]   ;;  %s3535_s5 = inlined_call_operand.hbm [shape: f32[256,128], index: 5, kind: output, shape index: {}]  }
   0x1   :  { %11 = vsyncpa [#allocation6], 0 }
   0x2   :  { %12 = vsyncpa [#allocation4], 0  ;;  %s2595_s18 = smov [#allocation5]   ;;  %s2501_s22 = scalar_lea.hbm %s3531_s1, 2048 }
   0x3   :  { %s30_s19 = sshll.u32 %s2595_s18, 4  ;;  %p2502_p0 = scmp.ne.s32.totalorder %s3531_s1, %s2501_s22  ;;  %s31_s19 = int_to_ptr.vmem [resolvable:$true] %s30_s19 }
   0x4   :  { %p2505_p1 = scmp.lt.u32.totalorder %s2501_s22, %s3531_s1 }
   0x6   :  { %p2507_p2 = pnand %p2505_p1, %p2502_p0 }
   0x8   :  { %2510 = shalt.err (!%p2507_p2)
}
   0x9   :  { %s2511_s27 = scalar_lea.vmem %s31_s19, 2048  ;;  %p2516_p4 = scmp.lt.s32.totalorder %s31_s19, %s31_s19 }
   0xa   :  { %p2512_p3 = scmp.ne.s32.totalorder %s31_s19, %s2511_s27  ;;  %p2517_p5 = scmp.lt.s32.totalorder %s2511_s27, %s2511_s27 }
   0xc   :  { %p2518_p6 = por %p2517_p5, %p2516_p4 }
   0xe   :  { %p2519_p7 = pnand %p2518_p6, %p2512_p3 }
  0x10   :  { %2522 = shalt.err (!%p2519_p7)
}
  0x11   :  { %s2596_s28 = smov 64   ;;  %s2597_s29 = smov 4  }
  0x12   :  { %36 = dma.hbm_to_vmem [thread:$0]  %s3531_s1, 2048, %s31_s19, [#allocation6], %s2596_s28, %s2596_s28, %s2597_s29  }
  0x13   :  { %s2598_s7 = smov [#allocation2]   ;;  %s2523_s11 = scalar_lea.hbm %s3530_s0, 4096 }
  0x14   :  { %s18_s8 = sshll.u32 %s2598_s7, 4  ;;  %p2524_p8 = scmp.ne.s32.totalorder %s3530_s0, %s2523_s11  ;;  %s19_s8 = int_to_ptr.vmem [resolvable:$true] %s18_s8 }
  0x15   :  { %p2527_p9 = scmp.lt.u32.totalorder %s2523_s11, %s3530_s0 }
  0x17   :  { %p2529_p10 = pnand %p2527_p9, %p2524_p8 }
  0x19   :  { %2532 = shalt.err (!%p2529_p10)
}
  0x1a   :  { %s2533_s16 = scalar_lea.vmem %s19_s8, 4096  ;;  %p2538_p12 = scmp.lt.s32.totalorder %s19_s8, %s19_s8 }
  0x1b   :  { %p2534_p11 = scmp.ne.s32.totalorder %s19_s8, %s2533_s16  ;;  %p2539_p13 = scmp.lt.s32.totalorder %s2533_s16, %s2533_s16 }
  0x1d   :  { %p2540_p0 = por %p2539_p13, %p2538_p12 }
  0x1f   :  { %p2541_p1 = pnand %p2540_p0, %p2534_p11 }
  0x21   :  { %2544 = shalt.err (!%p2541_p1)
}
  0x22   :  { %s2599_s1 = smov 128   ;;  %s2600_s17 = smov 8  }
  0x23   :  { %24 = dma.hbm_to_vmem [thread:$0]  %s3530_s0, 4096, %s19_s8, [#allocation3], %s2599_s1, %s2599_s1, %s2600_s17  }
  0x24   :  { %s2601_s20 = smov [#allocation7]   ;;  %s2545_s24 = scalar_lea.hbm %s3533_s3, 1024 }
  0x25   :  { %s44_s21 = sshll.u32 %s2601_s20, 4  ;;  %p2546_p2 = scmp.ne.s32.totalorder %s3533_s3, %s2545_s24  ;;  %s45_s21 = int_to_ptr.vmem [resolvable:$true] %s44_s21 }
  0x26   :  { %p2549_p3 = scmp.lt.u32.totalorder %s2545_s24, %s3533_s3 }
  0x28   :  { %p2551_p4 = pnand %p2549_p3, %p2546_p2 }
  0x2a   :  { %2554 = shalt.err (!%p2551_p4)
}
  0x2b   :  { %s2555_s6 = scalar_lea.vmem %s45_s21, 1024  ;;  %p2560_p6 = scmp.lt.s32.totalorder %s45_s21, %s45_s21 }
  0x2c   :  { %p2556_p5 = scmp.ne.s32.totalorder %s45_s21, %s2555_s6  ;;  %p2561_p7 = scmp.lt.s32.totalorder %s2555_s6, %s2555_s6 }
  0x2e   :  { %p2562_p8 = por %p2561_p7, %p2560_p6 }
  0x30   :  { %p2563_p9 = pnand %p2562_p8, %p2556_p5 }
  0x32   :  { %2566 = shalt.err (!%p2563_p9)
}
  0x33   :  { %50 = dma.hbm_to_vmem [thread:$0]  %s3533_s3, 1024, %s45_s21, [#allocation6], %s2596_s28, %s2596_s28, %s2597_s29  }
  0x34   :  { %2589 = dma.done.wait [#allocation3], 4096  }
  0x35   :  { %2590 = vsyncadd [#allocation3], 4294963200 }
  0x36   :  { %2591 = dma.done.wait [#allocation6], 3072  }
  0x37   :  { %2592 = vsyncadd [#allocation6], 4294964224  ;;  %v2140_v0 = vld [vmem:[#allocation5 + $0x40] sm:$0xff]   ;;  %v2142_v2 = vld [vmem:[#allocation5 + $0x48] sm:$0xff]  }
  0x38   :  { %v2141_v1 = vld [vmem:[#allocation5] sm:$0xff]   ;;  %1820 = vmatprep.subr.bf16.mxu0 %v2140_v0  ;;  %v2143_v3 = vld [vmem:[#allocation5 + $0x8] sm:$0xff]   ;;  %v2144_v4 = vld [vmem:[#allocation5 + $0x50] sm:$0xff]  }
  0x39   :  { %1821 = vmatpush3.bf16.msra.mxu0 %v2141_v1  ;;  %v2145_v5 = vld [vmem:[#allocation5 + $0x10] sm:$0xff]   ;;  %v2146_v6 = vld [vmem:[#allocation5 + $0x58] sm:$0xff]   ;;  %v2148_v8 = vld [vmem:[#allocation5 + $0x60] sm:$0xff]  }
  0x3a   :  { %1822 = vmatprep.subr.bf16.mxu0 %v2142_v2  ;;  %v2147_v7 = vld [vmem:[#allocation5 + $0x18] sm:$0xff]   ;;  %v2149_v9 = vld [vmem:[#allocation5 + $0x20] sm:$0xff]   ;;  %v2150_v10 = vld [vmem:[#allocation5 + $0x68] sm:$0xff]  }
  0x3b   :  { %v2158_v11 = vld [vmem:[#allocation2 + $0x4] ss:$8 sps:$4 sm:$0xff]   ;;  %v2152_v13 = vld [vmem:[#allocation5 + $0x70] sm:$0xff]   ;;  %v2154_v15 = vld [vmem:[#allocation5 + $0x78] sm:$0xff]  }
  0x3c   :  { %v2151_v12 = vld [vmem:[#allocation5 + $0x28] sm:$0xff]   ;;  %422 = vmatprep.mubr.bf16.mxu0 %v2158_v11  ;;  %v2153_v14 = vld [vmem:[#allocation5 + $0x30] sm:$0xff]   ;;  %v2155_v16 = vld [vmem:[#allocation5 + $0x38] sm:$0xff]  }
  0x3d   :  { %1823 = vmatpush3.bf16.msra.mxu0 %v2143_v3  ;;  %v2156_v17 = vld [vmem:[#allocation2] ss:$8 sps:$4 sm:$0xff]   ;;  %v2159_v18 = vld [vmem:[#allocation2 + $0x14] ss:$8 sps:$4 sm:$0xff]   ;;  %v2161_v19 = vld [vmem:[#allocation2 + $0x10] ss:$8 sps:$4 sm:$0xff]  }
  0x3e   :  { %1824 = vmatprep.subr.bf16.mxu0 %v2144_v4  ;;  %v2162_v20 = vld [vmem:[#allocation2 + $0x24] ss:$8 sps:$4 sm:$0xff]   ;;  %v2164_v21 = vld [vmem:[#allocation2 + $0x20] ss:$8 sps:$4 sm:$0xff]   ;;  %v2165_v22 = vld [vmem:[#allocation2 + $0x34] ss:$8 sps:$4 sm:$0xff]  }
  0x3f   :  { %v2167_v23 = vld [vmem:[#allocation2 + $0x30] ss:$8 sps:$4 sm:$0xff]   ;;  %v2168_v24 = vld [vmem:[#allocation2 + $0x44] ss:$8 sps:$4 sm:$0xff]   ;;  %v2170_v25 = vld [vmem:[#allocation2 + $0x40] ss:$8 sps:$4 sm:$0xff]  }
  0x40   :  { %v2171_v26 = vld [vmem:[#allocation2 + $0x54] ss:$8 sps:$4 sm:$0xff]   ;;  %v2173_v27 = vld [vmem:[#allocation2 + $0x50] ss:$8 sps:$4 sm:$0xff]   ;;  %v2174_v28 = vld [vmem:[#allocation2 + $0x64] ss:$8 sps:$4 sm:$0xff]  }
  0x41   :  { %1825 = vmatpush3.bf16.msra.mxu0 %v2145_v5  ;;  %v2176_v29 = vld [vmem:[#allocation2 + $0x60] ss:$8 sps:$4 sm:$0xff]   ;;  %v2177_v30 = vld [vmem:[#allocation2 + $0x74] ss:$8 sps:$4 sm:$0xff]   ;;  %v2179_v31 = vld [vmem:[#allocation2 + $0x70] ss:$8 sps:$4 sm:$0xff]  }
  0x42   :  { %1826 = vmatprep.subr.bf16.mxu0 %v2146_v6  ;;  %v2180_v32 = vld [vmem:[#allocation2 + $0x84] ss:$8 sps:$4 sm:$0xff]   ;;  %v2182_v33 = vld [vmem:[#allocation2 + $0x80] ss:$8 sps:$4 sm:$0xff]   ;;  %v2183_v34 = vld [vmem:[#allocation2 + $0x94] ss:$8 sps:$4 sm:$0xff]  }
  0x43   :  { %v2185_v35 = vld [vmem:[#allocation2 + $0x90] ss:$8 sps:$4 sm:$0xff]   ;;  %v2186_v36 = vld [vmem:[#allocation2 + $0xa4] ss:$8 sps:$4 sm:$0xff]   ;;  %v2188_v37 = vld [vmem:[#allocation2 + $0xa0] ss:$8 sps:$4 sm:$0xff]  }
  0x44   :  { %v2189_v38 = vld [vmem:[#allocation2 + $0xb4] ss:$8 sps:$4 sm:$0xff]   ;;  %v2191_v39 = vld [vmem:[#allocation2 + $0xb0] ss:$8 sps:$4 sm:$0xff]   ;;  %v2192_v40 = vld [vmem:[#allocation2 + $0xc4] ss:$8 sps:$4 sm:$0xff]  }
  0x45   :  { %1827 = vmatpush3.bf16.msra.mxu0 %v2147_v7  ;;  %v2194_v41 = vld [vmem:[#allocation2 + $0xc0] ss:$8 sps:$4 sm:$0xff]   ;;  %v2195_v42 = vld [vmem:[#allocation2 + $0xd4] ss:$8 sps:$4 sm:$0xff]   ;;  %v2197_v43 = vld [vmem:[#allocation2 + $0xd0] ss:$8 sps:$4 sm:$0xff]  }
  0x46   :  { %1828 = vmatprep.subr.bf16.mxu0 %v2148_v8  ;;  %v2204_v44 = vld [vmem:[#allocation7] sm:$0xff]   ;;  %v2205_v46 = vld [vmem:[#allocation7 + $0x8] sm:$0xff]   ;;  %v2206_v48 = vld [vmem:[#allocation7 + $0x10] sm:$0xff]  }
  0x47   :  { %v2198_v45 = vld [vmem:[#allocation2 + $0xe4] ss:$8 sps:$4 sm:$0xff]   ;;  %2116 = vmatprep.subr.bf16.mxu1 %v2204_v44  ;;  %v2200_v47 = vld [vmem:[#allocation2 + $0xe0] ss:$8 sps:$4 sm:$0xff]   ;;  %v2201_v49 = vld [vmem:[#allocation2 + $0xf4] ss:$8 sps:$4 sm:$0xff]  }
  0x48   :  { %2124 = vmatpush3.bf16.msra.mxu1 %v2204_v44  ;;  %v2207_v50 = vld [vmem:[#allocation7 + $0x18] sm:$0xff]   ;;  %v2208_v52 = vld [vmem:[#allocation7 + $0x20] sm:$0xff]   ;;  %v2209_v53 = vld [vmem:[#allocation7 + $0x28] sm:$0xff]  }
  0x49   :  { %1829 = vmatpush3.bf16.msra.mxu0 %v2149_v9  ;;  %2117 = vmatprep.subr.bf16.mxu1 %v2205_v46  ;;  %v2203_v51 = vld [vmem:[#allocation2 + $0xf0] ss:$8 sps:$4 sm:$0xff]   ;;  %v2681_v57 = vld [vmem:[%s3532_s2] ss:$0 sm:$0xff] }
  0x4a   :  { %1830 = vmatprep.subr.bf16.mxu0 %v2150_v10  ;;  %v2210_v54 = vld [vmem:[#allocation7 + $0x30] sm:$0xff]   ;;  %v2211_v55 = vld [vmem:[#allocation7 + $0x38] sm:$0xff]  }
  0x4c   :  { %2125 = vmatpush3.bf16.msra.mxu1 %v2205_v46 }
  0x4d   :  { %1831 = vmatpush3.bf16.msra.mxu0 %v2151_v12  ;;  %2118 = vmatprep.subr.bf16.mxu1 %v2206_v48 }
  0x4e   :  { %1832 = vmatprep.subr.bf16.mxu0 %v2152_v13 }
  0x50   :  { %2126 = vmatpush3.bf16.msra.mxu1 %v2206_v48 }
  0x51   :  { %1833 = vmatpush3.bf16.msra.mxu0 %v2153_v14  ;;  %2119 = vmatprep.subr.bf16.mxu1 %v2207_v50 }
  0x52   :  { %1834 = vmatprep.subr.bf16.mxu0 %v2154_v15 }
  0x54   :  { %2127 = vmatpush3.bf16.msra.mxu1 %v2207_v50 }
  0x55   :  { %1835 = vmatpush3.bf16.msra.mxu0 %v2155_v16  ;;  %2120 = vmatprep.subr.bf16.mxu1 %v2208_v52 }
  0x56   :  { %2068 = vmatprep.subr.bf16.mxu0 %v2204_v44 }
  0x58   :  { %423 = vmatmul.mubr.bf16.vlgmr.msra.gmra.mrb[0].mxu0 %v2156_v17  ;;  %2128 = vmatpush3.bf16.msra.mxu1 %v2208_v52 }
  0x59   :  { %430 = vmatprep.mubr.bf16.mxu0 %v2159_v18  ;;  %2069 = vmatpush3.bf16.msra.mxu0 %v2204_v44 }
  0x5a   :  { %2070 = vmatprep.subr.bf16.mxu0 %v2205_v46  ;;  %2121 = vmatprep.subr.bf16.mxu1 %v2209_v53 }
  0x5c   :  { %2129 = vmatpush3.bf16.msra.mxu1 %v2209_v53 }
  0x5d   :  { %2071 = vmatpush3.bf16.msra.mxu0 %v2205_v46  ;;  %2122 = vmatprep.subr.bf16.mxu1 %v2210_v54 }
  0x5e   :  { %2072 = vmatprep.subr.bf16.mxu0 %v2206_v48 }
  0x60   :  { %431 = vmatmul.mubr.bf16.gmra.mrb[4].mxu0 %v2161_v19  ;;  %2130 = vmatpush3.bf16.msra.mxu1 %v2210_v54 }
  0x61   :  { %438 = vmatprep.mubr.bf16.mxu0 %v2162_v20  ;;  %2073 = vmatpush3.bf16.msra.mxu0 %v2206_v48 }
  0x62   :  { %2074 = vmatprep.subr.bf16.mxu0 %v2207_v50  ;;  %2123 = vmatprep.subr.bf16.mxu1 %v2211_v55 }
  0x64   :  { %2131 = vmatpush3.bf16.msra.mxu1 %v2211_v55 }
  0x65   :  { %2075 = vmatpush3.bf16.msra.mxu0 %v2207_v50 }
  0x66   :  { %2076 = vmatprep.subr.bf16.mxu0 %v2208_v52 }
  0x68   :  { %439 = vmatmul.mubr.bf16.gmra.mrb[8].mxu0 %v2164_v21 }
  0x69   :  { %446 = vmatprep.mubr.bf16.mxu0 %v2165_v22  ;;  %2077 = vmatpush3.bf16.msra.mxu0 %v2208_v52 }
  0x6a   :  { %2078 = vmatprep.subr.bf16.mxu0 %v2209_v53 }
  0x6d   :  { %2079 = vmatpush3.bf16.msra.mxu0 %v2209_v53 }
  0x6e   :  { %2080 = vmatprep.subr.bf16.mxu0 %v2210_v54 }
  0x70   :  { %447 = vmatmul.mubr.bf16.gmra.mrb[12].mxu0 %v2167_v23 }
  0x71   :  { %454 = vmatprep.mubr.bf16.mxu0 %v2168_v24  ;;  %2081 = vmatpush3.bf16.msra.mxu0 %v2210_v54 }
  0x72   :  { %2082 = vmatprep.subr.bf16.mxu0 %v2211_v55 }
  0x75   :  { %2083 = vmatpush3.bf16.msra.mxu0 %v2211_v55 }
  0x78   :  { %455 = vmatmul.mubr.bf16.gmra.mrb[16].mxu0 %v2170_v25 }
  0x79   :  { %462 = vmatprep.mubr.bf16.mxu0 %v2171_v26 }
  0x80   :  { %463 = vmatmul.mubr.bf16.gmra.mrb[20].mxu0 %v2173_v27 }
  0x81   :  { %470 = vmatprep.mubr.bf16.mxu0 %v2174_v28 }
  0x88   :  { %471 = vmatmul.mubr.bf16.gmra.mrb[24].mxu0 %v2176_v29 }
  0x89   :  { %478 = vmatprep.mubr.bf16.mxu0 %v2177_v30 }
  0x90   :  { %479 = vmatmul.mubr.bf16.gmra.mrb[28].mxu0 %v2179_v31 }
  0x91   :  { %486 = vmatprep.mubr.bf16.mxu0 %v2180_v32 }
  0x98   :  { %487 = vmatmul.mubr.bf16.gmra.mrb[32].mxu0 %v2182_v33 }
  0x99   :  { %494 = vmatprep.mubr.bf16.mxu0 %v2183_v34 }
  0xa0   :  { %495 = vmatmul.mubr.bf16.gmra.mrb[36].mxu0 %v2185_v35 }
  0xa1   :  { %502 = vmatprep.mubr.bf16.mxu0 %v2186_v36 }
  0xa8   :  { %503 = vmatmul.mubr.bf16.gmra.mrb[40].mxu0 %v2188_v37 }
  0xa9   :  { %510 = vmatprep.mubr.bf16.mxu0 %v2189_v38 }
  0xb0   :  { %511 = vmatmul.mubr.bf16.gmra.mrb[44].mxu0 %v2191_v39 }
  0xb1   :  { %518 = vmatprep.mubr.bf16.mxu0 %v2192_v40 }
  0xb8   :  { %519 = vmatmul.mubr.bf16.gmra.mrb[48].mxu0 %v2194_v41 }
  0xb9   :  { %526 = vmatprep.mubr.bf16.mxu0 %v2195_v42 }
  0xc0   :  { %527 = vmatmul.mubr.bf16.gmra.mrb[52].mxu0 %v2197_v43 }
  0xc1   :  { %534 = vmatprep.mubr.bf16.mxu0 %v2198_v45 }
  0xc8   :  { %535 = vmatmul.mubr.bf16.gmra.mrb[56].mxu0 %v2200_v47 }
  0xc9   :  { %542 = vmatprep.mubr.bf16.mxu0 %v2201_v49 }
  0xd0   :  { %543 = vmatmul.mubr.bf16.gmra.mrb[60].mxu0 %v2203_v51 }
 0x12b   :  { %v1836_v56 = vpop.f32.mrb[0].mxu0 }
 0x12c   :  { %v1837_v58 = vpop.f32.mrb[1].mxu0 }
 0x12d   :  { %v1838_v59 = vadd.f32 %v1837_v58, %v1836_v56  ;;  %v1839_v60 = vpop.f32.mrb[2].mxu0 }
 0x12e   :  { %v1840_v61 = vpop.f32.mrb[3].mxu0 }
 0x12f   :  { %v2684_v62 = vadd.f32 %v1838_v59, %v2681_v57  ;;  %v1841_v63 = vadd.f32 %v1840_v61, %v1839_v60 }
 0x131   :  { %v583_v0 = vmin.f32 %v2684_v62, 20.0  ;;  %v2688_v1 = vadd.f32 %v1841_v63, %v2681_v57  ;;  %vm551_vm0 = vcmp.gt.f32.partialorder %v2684_v62, 20.0 }
 0x133   :  { %v615_v2 = vmul.f32 1.442695, %v583_v0  ;;  %v584_v3 = vmin.f32 %v2688_v1, 20.0  ;;  %v1842_v4 = vpop.f32.mrb[4].mxu0  ;;  %vm552_vm1 = vcmp.gt.f32.partialorder %v2688_v1, 20.0 }
 0x134   :  { %v1843_v5 = vpop.f32.mrb[5].mxu0 }
 0x135   :  { %2212 = vpow2.f32 %v615_v2  ;;  %v617_v6 = vmul.f32 1.442695, %v584_v3  ;;  %v1844_v7 = vadd.f32 %v1843_v5, %v1842_v4  ;;  %v1845_v8 = vpop.f32.mrb[6].mxu0 }
 0x136   :  { %v1846_v9 = vpop.f32.mrb[7].mxu0 }
 0x137   :  { %2214 = vpow2.f32 %v617_v6  ;;  %v2692_v10 = vadd.f32 %v1844_v7, %v2681_v57  ;;  %v1847_v11 = vadd.f32 %v1846_v9, %v1845_v8 }
 0x139   :  { %v585_v12 = vmin.f32 %v2692_v10, 20.0  ;;  %v2696_v13 = vadd.f32 %v1847_v11, %v2681_v57  ;;  %vm553_vm5 = vcmp.gt.f32.partialorder %v2692_v10, 20.0 }
 0x13b   :  { %v619_v14 = vmul.f32 1.442695, %v585_v12  ;;  %v586_v15 = vmin.f32 %v2696_v13, 20.0  ;;  %v1848_v16 = vpop.f32.mrb[8].mxu0  ;;  %vm554_vm6 = vcmp.gt.f32.partialorder %v2696_v13, 20.0 }
 0x13c   :  { %v1849_v17 = vpop.f32.mrb[9].mxu0 }
 0x13d   :  { %2216 = vpow2.f32 %v619_v14  ;;  %v621_v18 = vmul.f32 1.442695, %v586_v15  ;;  %v1850_v19 = vadd.f32 %v1849_v17, %v1848_v16  ;;  %v1851_v20 = vpop.f32.mrb[10].mxu0 }
 0x13e   :  { %v1852_v21 = vpop.f32.mrb[11].mxu0 }
 0x13f   :  { %v2213_v22 = vpop.eup %2212  ;;  %2218 = vpow2.f32 %v621_v18  ;;  %v2700_v23 = vadd.f32 %v1850_v19, %v2681_v57  ;;  %v1853_v24 = vadd.f32 %v1852_v21, %v1851_v20 }
 0x140   :  { %v679_v25 = vadd.f32 1.0, %v2213_v22  ;;  %v682_v34 = vmul.f32 -0.5, %v2213_v22  ;;  %v685_v49 = vand.u32 2147483647, %v2213_v22 }
 0x141   :  { %v2215_v26 = vpop.eup %2214  ;;  %v587_v27 = vmin.f32 %v2700_v23, 20.0  ;;  %v2704_v28 = vadd.f32 %v1853_v24, %v2681_v57  ;;  %vm555_vm8 = vcmp.gt.f32.partialorder %v2700_v23, 20.0 }
 0x142   :  { %2220 = vlog2.f32 %v679_v25  ;;  %v688_v29 = vadd.f32 1.0, %v2215_v26  ;;  %v691_v42 = vmul.f32 -0.5, %v2215_v26  ;;  %v683_v44 = vadd.f32 1.0, %v682_v34 }
 0x143   :  { %v623_v30 = vmul.f32 1.442695, %v587_v27  ;;  %v588_v31 = vmin.f32 %v2704_v28, 20.0  ;;  %v1854_v32 = vpop.f32.mrb[12].mxu0  ;;  %v694_v52 = vand.u32 2147483647, %v2215_v26 }
 0x144   :  { %v1855_v33 = vpop.f32.mrb[13].mxu0  ;;  %2222 = vlog2.f32 %v688_v29  ;;  %v692_v51 = vadd.f32 1.0, %v691_v42  ;;  %v684_v56 = vmul.f32 %v2213_v22, %v683_v44  ;;  %vm2721_vm2 = vcmp.lt.f32.partialorder %v685_v49, 0.0004427343 }
 0x145   :  { %2224 = vpow2.f32 %v623_v30  ;;  %v625_v35 = vmul.f32 1.442695, %v588_v31  ;;  %v1856_v36 = vadd.f32 %v1855_v33, %v1854_v32  ;;  %v1857_v37 = vpop.f32.mrb[14].mxu0  ;;  %vm695_vm3 = vcmp.lt.f32.partialorder %v694_v52, 0.0004427343 }
 0x146   :  { %v1858_v38 = vpop.f32.mrb[15].mxu0  ;;  %v693_v9 = vmul.f32 %v2215_v26, %v692_v51  ;;  %vm556_vm9 = vcmp.gt.f32.partialorder %v2704_v28, 20.0 }
 0x147   :  { %v2217_v39 = vpop.eup %2216  ;;  %v2708_v40 = vadd.f32 %v1856_v36, %v2681_v57  ;;  %v1859_v41 = vadd.f32 %v1858_v38, %v1857_v37  ;;  %2226 = vpow2.f32 %v625_v35 }
 0x148   :  { %v697_v43 = vadd.f32 1.0, %v2217_v39  ;;  %v700_v58 = vmul.f32 -0.5, %v2217_v39  ;;  %v703_v11 = vand.u32 2147483647, %v2217_v39 }
 0x149   :  { %v2710_v45 = vpop.eup %2218  ;;  %v589_v46 = vmin.f32 %v2708_v40, 20.0  ;;  %v2714_v47 = vadd.f32 %v1859_v41, %v2681_v57  ;;  %vm557_vm12 = vcmp.gt.f32.partialorder %v2708_v40, 20.0 }
 0x14a   :  { %2228 = vlog2.f32 %v697_v43  ;;  %v706_v48 = vadd.f32 1.0, %v2710_v45  ;;  %v709_v59 = vmul.f32 -0.5, %v2710_v45  ;;  %v701_v15 = vadd.f32 1.0, %v700_v58 }
 0x14b   :  { %v627_v50 = vmul.f32 1.442695, %v589_v46  ;;  %v590_v54 = vmin.f32 %v2714_v47, 20.0  ;;  %v1860_v55 = vpop.f32.mrb[16].mxu0  ;;  %v712_v29 = vand.u32 2147483647, %v2710_v45 }
 0x14c   :  { %v2221_v53 = vpop.eup %2220  ;;  %2230 = vlog2.f32 %v706_v48  ;;  %v1861_v60 = vpop.f32.mrb[17].mxu0  ;;  %v710_v16 = vadd.f32 1.0, %v709_v59  ;;  %v702_v34 = vmul.f32 %v2217_v39, %v701_v15  ;;  %vm2747_vm4 = vcmp.lt.f32.partialorder %v703_v11, 0.0004427343 }
 0x14d   :  { %2232 = vpow2.f32 %v627_v50  ;;  %v681_v61 = vmul.f32 0.6931472, %v2221_v53  ;;  %v629_v0 = vmul.f32 1.442695, %v590_v54  ;;  %v1862_v2 = vadd.f32 %v1861_v60, %v1860_v55  ;;  %v1863_v3 = vpop.f32.mrb[18].mxu0 }
 0x14e   :  { %v2223_v63 = vpop.eup %2222  ;;  %v1864_v6 = vpop.f32.mrb[19].mxu0  ;;  %v711_v37 = vmul.f32 %v2710_v45, %v710_v16  ;;  %vm713_vm7 = vcmp.lt.f32.partialorder %v712_v29, 0.0004427343  ;;  %vm558_vm13 = vcmp.gt.f32.partialorder %v2714_v47, 20.0 }
 0x14f   :  { %v2725_v5 = vpop.eup %2224  ;;  %v687_v7 = vsel %vm2721_vm2, %v684_v56, %v681_v61  ;;  %v690_v8 = vmul.f32 0.6931472, %v2223_v63  ;;  %2234 = vpow2.f32 %v629_v0  ;;  %v2730_v12 = vadd.f32 %v1862_v2, %v2681_v57 }
 0x150   :  { %v1865_v14 = vadd.f32 %v1864_v6, %v1863_v3  ;;  %v715_v18 = vadd.f32 1.0, %v2725_v5  ;;  %v967_v21 = vsel %vm551_vm0, %v2684_v62, %v687_v7  ;;  %v718_v51 = vmul.f32 -0.5, %v2725_v5 }
 0x151   :  { %v696_v17 = vsel %vm695_vm3, %v693_v9, %v690_v8  ;;  %v591_v19 = vmin.f32 %v2730_v12, 20.0  ;;  %v2743_v24 = vpop.eup %2226  ;;  %v721_v63 = vand.u32 2147483647, %v2725_v5  ;;  %vm559_vm0 = vcmp.gt.f32.partialorder %v2730_v12, 20.0 }
 0x152   :  { %v2735_v20 = vadd.f32 %v1865_v14, %v2681_v57  ;;  %v968_v22 = vsel %vm552_vm1, %v2688_v1, %v696_v17  ;;  %2236 = vlog2.f32 %v715_v18  ;;  %v724_v42 = vadd.f32 1.0, %v2743_v24 }
 0x153   :  { %v1866_v25 = vpop.f32.mrb[20].mxu0  ;;  %v999_v26 = vpack.c.bf16 %v968_v22, %v967_v21  ;;  %v631_v30 = vmul.f32 1.442695, %v591_v19  ;;  %v727_v0 = vmul.f32 -0.5, %v2743_v24  ;;  %v719_v6 = vadd.f32 1.0, %v718_v51 }
 0x154   :  { %v2229_v27 = vpop.eup %2228  ;;  %v592_v31 = vmin.f32 %v2735_v20, 20.0  ;;  %v1867_v32 = vpop.f32.mrb[21].mxu0  ;;  %v730_v8 = vand.u32 2147483647, %v2743_v24  ;;  %vm2786_vm10 = vcmp.lt.f32.partialorder %v721_v63, 0.0004427343 }
 0x155   :  { %v699_v33 = vmul.f32 0.6931472, %v2229_v27  ;;  %v1868_v35 = vadd.f32 %v1867_v32, %v1866_v25  ;;  %v1869_v1 = vpop.f32.mrb[22].mxu0  ;;  %2084 = vmatprep.mubr.bf16.mxu0 %v999_v26  ;;  %2238 = vpow2.f32 %v631_v30  ;;  %v728_v19 = vadd.f32 1.0, %v727_v0 }
 0x156   :  { %v2231_v36 = vpop.eup %2230  ;;  %v633_v38 = vmul.f32 1.442695, %v592_v31  ;;  %v1870_v41 = vpop.f32.mrb[23].mxu0  ;;  %v720_v26 = vmul.f32 %v2725_v5, %v719_v6  ;;  %vm2798_vm11 = vcmp.lt.f32.partialorder %v730_v8, 0.0004427343  ;;  %vm560_vm2 = vcmp.gt.f32.partialorder %v2735_v20, 20.0 }
 0x157   :  { %v2753_v43 = vpop.eup %2232  ;;  %v705_v39 = vsel %vm2747_vm4, %v702_v34, %v699_v33  ;;  %v708_v44 = vmul.f32 0.6931472, %v2231_v36  ;;  %v2758_v46 = vadd.f32 %v1868_v35, %v2681_v57  ;;  %v1871_v48 = vadd.f32 %v1870_v41, %v1869_v1 }
 0x158   :  { %2240 = vpow2.f32 %v633_v38  ;;  %v969_v53 = vsel %vm553_vm5, %v2692_v10, %v705_v39  ;;  %v733_v55 = vadd.f32 1.0, %v2753_v43  ;;  %v736_v9 = vmul.f32 -0.5, %v2753_v43 }
 0x159   :  { %v714_v45 = vsel %vm713_vm7, %v711_v37, %v708_v44  ;;  %v593_v49 = vmin.f32 %v2758_v46, 20.0  ;;  %v2764_v50 = vadd.f32 %v1871_v48, %v2681_v57  ;;  %v2767_v52 = vpop.eup %2234  ;;  %2242 = vlog2.f32 %v724_v42 }
 0x15a   :  { %v970_v54 = vsel %vm554_vm6, %v2696_v13, %v714_v45  ;;  %2244 = vlog2.f32 %v733_v55  ;;  %v742_v2 = vadd.f32 1.0, %v2767_v52  ;;  %v745_v11 = vmul.f32 -0.5, %v2767_v52 }
 0x15b   :  { %v1000_v56 = vpack.c.bf16 %v970_v54, %v969_v53  ;;  %v635_v58 = vmul.f32 1.442695, %v593_v49  ;;  %v594_v59 = vmin.f32 %v2764_v50, 20.0  ;;  %v1872_v60 = vpop.f32.mrb[24].mxu0  ;;  %v739_v21 = vand.u32 2147483647, %v2753_v43 }
 0x15c   :  { %v1873_v61 = vpop.f32.mrb[25].mxu0  ;;  %v2237_v3 = vpop.eup %2236  ;;  %v737_v30 = vadd.f32 1.0, %v736_v9  ;;  %v746_v31 = vadd.f32 1.0, %v745_v11  ;;  %v729_v37 = vmul.f32 %v2743_v24, %v728_v19  ;;  %v748_v41 = vand.u32 2147483647, %v2767_v52 }
 0x15d   :  { %2246 = vpow2.f32 %v635_v58  ;;  %v637_v10 = vmul.f32 1.442695, %v594_v59  ;;  %v1874_v13 = vadd.f32 %v1873_v61, %v1872_v60  ;;  %v1875_v4 = vpop.f32.mrb[26].mxu0  ;;  %2085 = vmatmul.mubr.bf16.vlgmr.msra.gmra.mrb[64].mxu0 %v1000_v56  ;;  %v717_v16 = vmul.f32 0.6931472, %v2237_v3 }
 0x15e   :  { %v1876_v7 = vpop.f32.mrb[27].mxu0  ;;  %2248 = vlog2.f32 %v742_v2  ;;  %vm2810_vm14 = vcmp.lt.f32.partialorder %v739_v21, 0.0004427343  ;;  %v738_v24 = vmul.f32 %v2753_v43, %v737_v30  ;;  %v747_v59 = vmul.f32 %v2767_v52, %v746_v31 }
 0x15f   :  { %v2781_v14 = vadd.f32 %v1874_v13, %v2681_v57  ;;  %v1877_v15 = vadd.f32 %v1876_v7, %v1875_v4  ;;  %v2783_v17 = vpop.eup %2238  ;;  %2250 = vpow2.f32 %v637_v10  ;;  %v723_v35 = vsel %vm2786_vm10, %v720_v26, %v717_v16 }
 0x160   :  { %v751_v32 = vadd.f32 1.0, %v2783_v17  ;;  %v971_v49 = vsel %vm555_vm8, %v2700_v23, %v723_v35  ;;  %v754_v53 = vmul.f32 -0.5, %v2783_v17  ;;  %vm2831_vm15 = vcmp.lt.f32.partialorder %v748_v41, 0.0004427343 }
 0x161   :  { %v595_v22 = vmin.f32 %v2781_v14, 20.0  ;;  %v2793_v25 = vadd.f32 %v1877_v15, %v2681_v57  ;;  %v757_v9 = vand.u32 2147483647, %v2783_v17  ;;  %vm561_vm4 = vcmp.gt.f32.partialorder %v2758_v46, 20.0 }
 0x162   :  { %v2796_v27 = vpop.eup %2240  ;;  %2252 = vlog2.f32 %v751_v32  ;;  %v755_v13 = vadd.f32 1.0, %v754_v53  ;;  %vm562_vm5 = vcmp.gt.f32.partialorder %v2764_v50, 20.0  ;;  %vm563_vm8 = vcmp.gt.f32.partialorder %v2781_v14, 20.0 }
 0x163   :  { %v639_v33 = vmul.f32 1.442695, %v595_v22  ;;  %v596_v34 = vmin.f32 %v2793_v25, 20.0  ;;  %v1878_v62 = vpop.f32.mrb[28].mxu0  ;;  %v760_v5 = vadd.f32 1.0, %v2796_v27  ;;  %v2243_v1 = vpop.eup %2242  ;;  %v763_v63 = vmul.f32 -0.5, %v2796_v27 }
 0x164   :  { %v1879_v36 = vpop.f32.mrb[29].mxu0  ;;  %v726_v48 = vmul.f32 0.6931472, %v2243_v1  ;;  %v2245_v45 = vpop.eup %2244  ;;  %v756_v32 = vmul.f32 %v2783_v17, %v755_v13  ;;  %vm2864_vm1 = vcmp.lt.f32.partialorder %v757_v9, 0.0004427343 }
 0x165   :  { %2254 = vpow2.f32 %v639_v33  ;;  %v641_v42 = vmul.f32 1.442695, %v596_v34  ;;  %v1880_v39 = vadd.f32 %v1879_v36, %v1878_v62  ;;  %v1881_v44 = vpop.f32.mrb[30].mxu0  ;;  %v735_v43 = vmul.f32 0.6931472, %v2245_v45 }
 0x166   :  { %v1882_v51 = vpop.f32.mrb[31].mxu0  ;;  %2256 = vlog2.f32 %v760_v5  ;;  %v732_v56 = vsel %vm2798_vm11, %v729_v37, %v726_v48  ;;  %v764_v18 = vadd.f32 1.0, %v763_v63  ;;  %v766_v33 = vand.u32 2147483647, %v2796_v27 }
 0x167   :  { %v2820_v54 = vpop.eup %2246  ;;  %v2823_v55 = vadd.f32 %v1880_v39, %v2681_v57  ;;  %v1883_v58 = vadd.f32 %v1882_v51, %v1881_v44  ;;  %v972_v23 = vsel %vm556_vm9, %v2704_v28, %v732_v56  ;;  %2258 = vpow2.f32 %v641_v42 }
 0x168   :  { %v2249_v60 = vpop.eup %2248  ;;  %v1001_v2 = vpack.c.bf16 %v972_v23, %v971_v49  ;;  %v741_v52 = vsel %vm2810_vm14, %v738_v24, %v735_v43  ;;  %v769_v28 = vadd.f32 1.0, %v2820_v54  ;;  %v765_v17 = vmul.f32 %v2796_v27, %v764_v18 }
 0x169   :  { %v597_v0 = vmin.f32 %v2823_v55, 20.0  ;;  %v2838_v3 = vadd.f32 %v1883_v58, %v2681_v57  ;;  %v744_v10 = vmul.f32 0.6931472, %v2249_v60  ;;  %v2843_v4 = vpop.eup %2250  ;;  %v973_v16 = vsel %vm557_vm12, %v2708_v40, %v741_v52 }
 0x16a   :  { %2088 = vmatprep.mubr.bf16.mxu0 %v1001_v2  ;;  %2260 = vlog2.f32 %v769_v28  ;;  %v778_v34 = vadd.f32 1.0, %v2843_v4  ;;  %v772_v36 = vmul.f32 -0.5, %v2820_v54  ;;  %vm767_vm3 = vcmp.lt.f32.partialorder %v766_v33, 0.0004427343 }
 0x16b   :  { %v643_v6 = vmul.f32 1.442695, %v597_v0  ;;  %v598_v7 = vmin.f32 %v2838_v3, 20.0  ;;  %v1884_v8 = vpop.f32.mrb[32].mxu0  ;;  %v750_v15 = vsel %vm2831_vm15, %v747_v59, %v744_v10  ;;  %v781_v39 = vmul.f32 -0.5, %v2843_v4 }
 0x16c   :  { %v1885_v11 = vpop.f32.mrb[33].mxu0  ;;  %v974_v26 = vsel %vm558_vm13, %v2714_v47, %v750_v15  ;;  %v2253_v29 = vpop.eup %2252  ;;  %v775_v24 = vand.u32 2147483647, %v2820_v54  ;;  %v773_v59 = vadd.f32 1.0, %v772_v36  ;;  %v784_v10 = vand.u32 2147483647, %v2843_v4 }
 0x16d   :  { %2262 = vpow2.f32 %v643_v6  ;;  %v645_v19 = vmul.f32 1.442695, %v598_v7  ;;  %v1886_v21 = vadd.f32 %v1885_v11, %v1884_v8  ;;  %v1887_v22 = vpop.f32.mrb[34].mxu0  ;;  %v1002_v30 = vpack.c.bf16 %v974_v26, %v973_v16 }
 0x16e   :  { %v1888_v31 = vpop.f32.mrb[35].mxu0  ;;  %v753_v5 = vmul.f32 0.6931472, %v2253_v29  ;;  %v782_v52 = vadd.f32 1.0, %v781_v39  ;;  %v774_v7 = vmul.f32 %v2820_v54, %v773_v59  ;;  %vm2904_vm6 = vcmp.lt.f32.partialorder %v775_v24, 0.0004427343 }
 0x16f   :  { %v2859_v40 = vpop.eup %2254  ;;  %2264 = vpow2.f32 %v645_v19  ;;  %v2862_v62 = vadd.f32 %v1886_v21, %v2681_v57  ;;  %v1889_v35 = vadd.f32 %v1888_v31, %v1887_v22  ;;  %2089 = vmatmul.mubr.bf16.gmra.mrb[68].mxu0 %v1002_v30  ;;  %vm2913_vm7 = vcmp.lt.f32.partialorder %v784_v10, 0.0004427343 }
 0x170   :  { %v2257_v1 = vpop.eup %2256  ;;  %2266 = vlog2.f32 %v778_v34  ;;  %v759_v41 = vsel %vm2864_vm1, %v756_v32, %v753_v5  ;;  %v787_v44 = vadd.f32 1.0, %v2859_v40  ;;  %v790_v63 = vmul.f32 -0.5, %v2859_v40 }
 0x171   :  { %v599_v37 = vmin.f32 %v2862_v62, 20.0  ;;  %v2872_v38 = vadd.f32 %v1889_v35, %v2681_v57  ;;  %v762_v42 = vmul.f32 0.6931472, %v2257_v1  ;;  %v2879_v27 = vpop.eup %2258  ;;  %v975_v56 = vsel %vm559_vm0, %v2730_v12, %v759_v41 }
 0x172   :  { %2268 = vlog2.f32 %v787_v44  ;;  %v796_v13 = vadd.f32 1.0, %v2879_v27  ;;  %v791_v15 = vadd.f32 1.0, %v790_v63  ;;  %v783_v26 = vmul.f32 %v2843_v4, %v782_v52 }
 0x173   :  { %v647_v48 = vmul.f32 1.442695, %v599_v37  ;;  %v600_v45 = vmin.f32 %v2872_v38, 20.0  ;;  %v1890_v49 = vpop.f32.mrb[36].mxu0  ;;  %v768_v51 = vsel %vm767_vm3, %v765_v17, %v762_v42  ;;  %v799_v32 = vmul.f32 -0.5, %v2879_v27 }
 0x174   :  { %v1891_v53 = vpop.f32.mrb[37].mxu0  ;;  %v976_v58 = vsel %vm560_vm2, %v2735_v20, %v768_v51  ;;  %v2261_v0 = vpop.eup %2260  ;;  %v792_v1 = vmul.f32 %v2859_v40, %v791_v15  ;;  %v793_v4 = vand.u32 2147483647, %v2859_v40  ;;  %vm564_vm9 = vcmp.gt.f32.partialorder %v2793_v25, 20.0 }
 0x175   :  { %v649_v60 = vmul.f32 1.442695, %v600_v45  ;;  %v1892_v23 = vadd.f32 %v1891_v53, %v1890_v49  ;;  %v1893_v43 = vpop.f32.mrb[38].mxu0  ;;  %v1003_v61 = vpack.c.bf16 %v976_v58, %v975_v56  ;;  %2270 = vpow2.f32 %v647_v48 }
 0x176   :  { %v1894_v2 = vpop.f32.mrb[39].mxu0  ;;  %v771_v6 = vmul.f32 0.6931472, %v2261_v0  ;;  %2272 = vlog2.f32 %v796_v13  ;;  %v802_v41 = vand.u32 2147483647, %v2879_v27  ;;  %v800_v49 = vadd.f32 1.0, %v799_v32 }
 0x177   :  { %v2890_v28 = vpop.eup %2262  ;;  %v2893_v12 = vadd.f32 %v1892_v23, %v2681_v57  ;;  %2092 = vmatprep.mubr.bf16.mxu0 %v1003_v61  ;;  %v1895_v20 = vadd.f32 %v1894_v2, %v1893_v43  ;;  %2274 = vpow2.f32 %v649_v60  ;;  %vm2943_vm10 = vcmp.lt.f32.partialorder %v793_v4, 0.0004427343 }
 0x178   :  { %v805_v54 = vadd.f32 1.0, %v2890_v28  ;;  %v777_v22 = vsel %vm2904_vm6, %v774_v7, %v771_v6  ;;  %v808_v51 = vmul.f32 -0.5, %v2890_v28  ;;  %vm2947_vm11 = vcmp.lt.f32.partialorder %v802_v41, 0.0004427343 }
 0x179   :  { %v2896_v8 = vpop.eup %2264  ;;  %v601_v9 = vmin.f32 %v2893_v12, 20.0  ;;  %v2900_v11 = vadd.f32 %v1895_v20, %v2681_v57  ;;  %v977_v36 = vsel %vm561_vm4, %v2758_v46, %v777_v22  ;;  %v811_v60 = vand.u32 2147483647, %v2890_v28 }
 0x17a   :  { %v2267_v16 = vpop.eup %2266  ;;  %2276 = vlog2.f32 %v805_v54  ;;  %v814_v33 = vadd.f32 1.0, %v2896_v8  ;;  %v817_v56 = vmul.f32 -0.5, %v2896_v8  ;;  %vm565_vm12 = vcmp.gt.f32.partialorder %v2823_v55, 20.0 }
 0x17b   :  { %v602_v19 = vmin.f32 %v2900_v11, 20.0  ;;  %v1896_v21 = vpop.f32.mrb[40].mxu0  ;;  %v780_v31 = vmul.f32 0.6931472, %v2267_v16  ;;  %v651_v34 = vmul.f32 1.442695, %v601_v9  ;;  %v801_v10 = vmul.f32 %v2879_v27, %v800_v49 }
 0x17c   :  { %v1897_v30 = vpop.f32.mrb[41].mxu0  ;;  %v2269_v47 = vpop.eup %2268  ;;  %2278 = vlog2.f32 %v814_v33  ;;  %vm566_vm13 = vcmp.gt.f32.partialorder %v2838_v3, 20.0  ;;  %v809_v13 = vadd.f32 1.0, %v808_v51  ;;  %v818_v9 = vadd.f32 1.0, %v817_v56 }
 0x17d   :  { %v1898_v35 = vadd.f32 %v1897_v30, %v1896_v21  ;;  %v1899_v5 = vpop.f32.mrb[42].mxu0  ;;  %v786_v17 = vsel %vm2913_vm7, %v783_v26, %v780_v31  ;;  %v653_v42 = vmul.f32 1.442695, %v602_v19  ;;  %v789_v45 = vmul.f32 0.6931472, %v2269_v47 }
 0x17e   :  { %v1900_v37 = vpop.f32.mrb[43].mxu0  ;;  %v978_v40 = vsel %vm562_vm5, %v2764_v50, %v786_v17  ;;  %2280 = vpow2.f32 %v651_v34  ;;  %v820_v15 = vand.u32 2147483647, %v2896_v8  ;;  %v810_v33 = vmul.f32 %v2890_v28, %v809_v13 }
 0x17f   :  { %v2930_v39 = vadd.f32 %v1898_v35, %v2681_v57  ;;  %v1901_v44 = vadd.f32 %v1900_v37, %v1899_v5  ;;  %v1004_v48 = vpack.c.bf16 %v978_v40, %v977_v36  ;;  %v2936_v24 = vpop.eup %2270  ;;  %2282 = vpow2.f32 %v653_v42 }
 0x180   :  { %v2273_v58 = vpop.eup %2272  ;;  %v795_v0 = vsel %vm2943_vm10, %v792_v1, %v789_v45  ;;  %v823_v20 = vadd.f32 1.0, %v2936_v24  ;;  %vm2975_vm14 = vcmp.lt.f32.partialorder %v811_v60, 0.0004427343  ;;  %v819_v1 = vmul.f32 %v2896_v8, %v818_v9 }
 0x181   :  { %v603_v46 = vmin.f32 %v2930_v39, 20.0  ;;  %v2940_v53 = vadd.f32 %v1901_v44, %v2681_v57  ;;  %2093 = vmatmul.mubr.bf16.gmra.mrb[72].mxu0 %v1004_v48  ;;  %v2952_v23 = vpop.eup %2274  ;;  %v798_v52 = vmul.f32 0.6931472, %v2273_v58  ;;  %v979_v54 = vsel %vm563_vm8, %v2781_v14, %v795_v0 }
 0x182   :  { %v832_v27 = vadd.f32 1.0, %v2952_v23  ;;  %vm821_vm15 = vcmp.lt.f32.partialorder %v820_v15, 0.0004427343  ;;  %v826_v4 = vmul.f32 -0.5, %v2936_v24  ;;  %v835_v37 = vmul.f32 -0.5, %v2952_v23 }
 0x183   :  { %v655_v43 = vmul.f32 1.442695, %v603_v46  ;;  %v604_v61 = vmin.f32 %v2940_v53, 20.0  ;;  %v1902_v63 = vpop.f32.mrb[44].mxu0  ;;  %v804_v18 = vsel %vm2947_vm11, %v801_v10, %v798_v52  ;;  %v829_v46 = vand.u32 2147483647, %v2936_v24 }
 0x184   :  { %v1903_v2 = vpop.f32.mrb[45].mxu0  ;;  %v2277_v16 = vpop.eup %2276  ;;  %v980_v26 = vsel %vm564_vm9, %v2793_v25, %v804_v18  ;;  %v827_v59 = vadd.f32 1.0, %v826_v4  ;;  %vm567_vm0 = vcmp.gt.f32.partialorder %v2862_v62, 20.0  ;;  %vm568_vm1 = vcmp.gt.f32.partialorder %v2872_v38, 20.0 }
 0x185   :  { %2284 = vpow2.f32 %v655_v43  ;;  %v1904_v6 = vadd.f32 %v1903_v2, %v1902_v63  ;;  %v1905_v7 = vpop.f32.mrb[46].mxu0  ;;  %v657_v21 = vmul.f32 1.442695, %v604_v61  ;;  %v1005_v31 = vpack.c.bf16 %v980_v26, %v979_v54 }
 0x186   :  { %v1906_v19 = vpop.f32.mrb[47].mxu0  ;;  %2286 = vlog2.f32 %v823_v20  ;;  %v2279_v30 = vpop.eup %2278  ;;  %v807_v32 = vmul.f32 0.6931472, %v2277_v16  ;;  %v838_v61 = vand.u32 2147483647, %v2952_v23  ;;  %vm569_vm4 = vcmp.gt.f32.partialorder %v2893_v12, 20.0 }
 0x187   :  { %v2969_v22 = vadd.f32 %v1904_v6, %v2681_v57  ;;  %v1907_v29 = vadd.f32 %v1906_v19, %v1905_v7  ;;  %v816_v5 = vmul.f32 0.6931472, %v2279_v30  ;;  %2096 = vmatprep.mubr.bf16.mxu0 %v1005_v31  ;;  %2288 = vlog2.f32 %v832_v27 }
 0x188   :  { %v813_v25 = vsel %vm2975_vm14, %v810_v33, %v807_v32  ;;  %v2987_v28 = vpop.eup %2280  ;;  %2290 = vpow2.f32 %v657_v21  ;;  %v828_v6 = vmul.f32 %v2936_v24, %v827_v59  ;;  %vm3017_vm2 = vcmp.lt.f32.partialorder %v829_v46, 0.0004427343 }
 0x189   :  { %v605_v34 = vmin.f32 %v2969_v22, 20.0  ;;  %v2981_v35 = vadd.f32 %v1907_v29, %v2681_v57  ;;  %v822_v36 = vsel %vm821_vm15, %v819_v1, %v816_v5  ;;  %v981_v8 = vsel %vm565_vm12, %v2823_v55, %v813_v25  ;;  %v2997_v44 = vpop.eup %2282 }
 0x18a   :  { %v982_v40 = vsel %vm566_vm13, %v2838_v3, %v822_v36  ;;  %v841_v56 = vadd.f32 1.0, %v2987_v28  ;;  %v836_v3 = vadd.f32 1.0, %v835_v37  ;;  %v850_v63 = vadd.f32 1.0, %v2997_v44 }
 0x18b   :  { %v659_v47 = vmul.f32 1.442695, %v605_v34  ;;  %v1908_v17 = vpop.f32.mrb[48].mxu0  ;;  %v606_v41 = vmin.f32 %v2981_v35, 20.0  ;;  %v1006_v49 = vpack.c.bf16 %v982_v40, %v981_v8  ;;  %v844_v10 = vmul.f32 -0.5, %v2987_v28 }
 0x18c   :  { %v1909_v42 = vpop.f32.mrb[49].mxu0  ;;  %v853_v13 = vmul.f32 -0.5, %v2997_v44  ;;  %v837_v9 = vmul.f32 %v2952_v23, %v836_v3  ;;  %vm3022_vm3 = vcmp.lt.f32.partialorder %v838_v61, 0.0004427343  ;;  %v847_v32 = vand.u32 2147483647, %v2987_v28 }
 0x18d   :  { %v1910_v48 = vadd.f32 %v1909_v42, %v1908_v17  ;;  %v1911_v45 = vpop.f32.mrb[50].mxu0  ;;  %2292 = vpow2.f32 %v659_v47  ;;  %2097 = vmatmul.mubr.bf16.gmra.mrb[76].mxu0 %v1006_v49  ;;  %v661_v43 = vmul.f32 1.442695, %v606_v41  ;;  %v845_v31 = vadd.f32 1.0, %v844_v10 }
 0x18e   :  { %v1912_v51 = vpop.f32.mrb[51].mxu0  ;;  %2294 = vlog2.f32 %v841_v56  ;;  %v854_v33 = vadd.f32 1.0, %v853_v13  ;;  %v856_v1 = vand.u32 2147483647, %v2997_v44  ;;  %vm570_vm5 = vcmp.gt.f32.partialorder %v2900_v11, 20.0 }
 0x18f   :  { %v3001_v58 = vpop.eup %2284  ;;  %v3004_v50 = vadd.f32 %v1910_v48, %v2681_v57  ;;  %v1913_v55 = vadd.f32 %v1912_v51, %v1911_v45  ;;  %2296 = vlog2.f32 %v850_v63  ;;  %vm3054_vm6 = vcmp.lt.f32.partialorder %v847_v32, 0.0004427343 }
 0x190   :  { %v2287_v60 = vpop.eup %2286  ;;  %2298 = vpow2.f32 %v661_v43  ;;  %v859_v19 = vadd.f32 1.0, %v3001_v58  ;;  %vm3060_vm7 = vcmp.lt.f32.partialorder %v856_v1, 0.0004427343  ;;  %v846_v3 = vmul.f32 %v2987_v28, %v845_v31 }
 0x191   :  { %v607_v0 = vmin.f32 %v3004_v50, 20.0  ;;  %v3010_v2 = vadd.f32 %v1913_v55, %v2681_v57  ;;  %v825_v52 = vmul.f32 0.6931472, %v2287_v60  ;;  %v2289_v15 = vpop.eup %2288  ;;  %v855_v60 = vmul.f32 %v2997_v44, %v854_v33 }
 0x192   :  { %v3027_v27 = vpop.eup %2290  ;;  %v834_v23 = vmul.f32 0.6931472, %v2289_v15  ;;  %2300 = vlog2.f32 %v859_v19  ;;  %vm571_vm10 = vcmp.gt.f32.partialorder %v2930_v39, 20.0  ;;  %vm572_vm11 = vcmp.gt.f32.partialorder %v2940_v53, 20.0 }
 0x193   :  { %v1914_v20 = vpop.f32.mrb[52].mxu0  ;;  %v663_v16 = vmul.f32 1.442695, %v607_v0  ;;  %v608_v24 = vmin.f32 %v3010_v2, 20.0  ;;  %v831_v29 = vsel %vm3017_vm2, %v828_v6, %v825_v52  ;;  %v868_v17 = vadd.f32 1.0, %v3027_v27 }
 0x194   :  { %v1915_v18 = vpop.f32.mrb[53].mxu0  ;;  %v840_v34 = vsel %vm3022_vm3, %v837_v9, %v834_v23  ;;  %v983_v4 = vsel %vm567_vm0, %v2862_v62, %v831_v29  ;;  %v862_v62 = vmul.f32 -0.5, %v3001_v58  ;;  %v871_v49 = vmul.f32 -0.5, %v3027_v27 }
 0x195   :  { %v1916_v21 = vadd.f32 %v1915_v18, %v1914_v20  ;;  %v1917_v26 = vpop.f32.mrb[54].mxu0  ;;  %2302 = vpow2.f32 %v663_v16  ;;  %v984_v47 = vsel %vm568_vm1, %v2872_v38, %v840_v34  ;;  %v665_v36 = vmul.f32 1.442695, %v608_v24 }
 0x196   :  { %v1918_v30 = vpop.f32.mrb[55].mxu0  ;;  %v1007_v41 = vpack.c.bf16 %v984_v47, %v983_v4  ;;  %2304 = vlog2.f32 %v868_v17  ;;  %v865_v0 = vand.u32 2147483647, %v3001_v58  ;;  %v863_v6 = vadd.f32 1.0, %v862_v62 }
 0x197   :  { %v3035_v14 = vadd.f32 %v1916_v21, %v2681_v57  ;;  %v1919_v5 = vadd.f32 %v1918_v30, %v1917_v26  ;;  %v3040_v25 = vpop.eup %2292  ;;  %2306 = vpow2.f32 %v665_v36  ;;  %v872_v44 = vadd.f32 1.0, %v871_v49 }
 0x198   :  { %v2295_v8 = vpop.eup %2294  ;;  %2100 = vmatprep.mubr.bf16.mxu1 %v1007_v41  ;;  %v877_v51 = vadd.f32 1.0, %v3040_v25  ;;  %v874_v9 = vand.u32 2147483647, %v3027_v27  ;;  %vm3091_vm8 = vcmp.lt.f32.partialorder %v865_v0, 0.0004427343  ;;  %v864_v31 = vmul.f32 %v3001_v58, %v863_v6 }
 0x199   :  { %v609_v37 = vmin.f32 %v3035_v14, 20.0  ;;  %v3051_v42 = vadd.f32 %v1919_v5, %v2681_v57  ;;  %v2297_v46 = vpop.eup %2296  ;;  %v843_v59 = vmul.f32 0.6931472, %v2295_v8  ;;  %v873_v5 = vmul.f32 %v3027_v27, %v872_v44  ;;  %v2468_v27 = vld [vmem:[%s3532_s2] ss:$0 sm:$0xff] }
 0x19a   :  { %v852_v63 = vmul.f32 0.6931472, %v2297_v46  ;;  %v3069_v52 = vpop.eup %2298  ;;  %2308 = vlog2.f32 %v877_v51  ;;  %vm3097_vm9 = vcmp.lt.f32.partialorder %v874_v9, 0.0004427343  ;;  %v880_v1 = vmul.f32 -0.5, %v3040_v25 }
 0x19b   :  { %v610_v38 = vmin.f32 %v3051_v42, 20.0  ;;  %v1920_v48 = vpop.f32.mrb[56].mxu0  ;;  %v667_v56 = vmul.f32 1.442695, %v609_v37  ;;  %v849_v13 = vsel %vm3054_vm6, %v846_v3, %v843_v59  ;;  %v889_v41 = vmul.f32 -0.5, %v3069_v52 }
 0x19c   :  { %v1921_v55 = vpop.f32.mrb[57].mxu0  ;;  %v858_v28 = vsel %vm3060_vm7, %v855_v60, %v852_v63  ;;  %v2301_v15 = vpop.eup %2300  ;;  %v985_v16 = vsel %vm569_vm4, %v2893_v12, %v849_v13  ;;  %v886_v12 = vadd.f32 1.0, %v3069_v52  ;;  %v881_v59 = vadd.f32 1.0, %v880_v1 }
 0x19d   :  { %v1922_v43 = vadd.f32 %v1921_v55, %v1920_v48  ;;  %v1923_v61 = vpop.f32.mrb[58].mxu0  ;;  %v669_v10 = vmul.f32 1.442695, %v610_v38  ;;  %2310 = vpow2.f32 %v667_v56  ;;  %v986_v18 = vsel %vm570_vm5, %v2900_v11, %v858_v28 }
 0x19e   :  { %v1924_v20 = vpop.f32.mrb[59].mxu0  ;;  %v1008_v24 = vpack.c.bf16 %v986_v18, %v985_v16  ;;  %v861_v21 = vmul.f32 0.6931472, %v2301_v15  ;;  %v883_v60 = vand.u32 2147483647, %v3040_v25  ;;  %vm573_vm13 = vcmp.gt.f32.partialorder %v2969_v22, 20.0 }
 0x19f   :  { %v3074_v7 = vadd.f32 %v1922_v43, %v2681_v57  ;;  %v1925_v54 = vadd.f32 %v1924_v20, %v1923_v61  ;;  %v3086_v26 = vpop.eup %2302  ;;  %2312 = vpow2.f32 %v669_v10  ;;  %v890_v43 = vadd.f32 1.0, %v889_v41 }
 0x1a0   :  { %2101 = vmatmul.mubr.bf16.vlgmr.msra.gmra.mrb[0].mxu1 %v1008_v24  ;;  %v2305_v33 = vpop.eup %2304  ;;  %2314 = vlog2.f32 %v886_v12  ;;  %v867_v17 = vsel %vm3091_vm8, %v864_v31, %v861_v21  ;;  %v895_v8 = vadd.f32 1.0, %v3086_v26  ;;  %v892_v10 = vand.u32 2147483647, %v3069_v52 }
 0x1a1   :  { %v611_v19 = vmin.f32 %v3074_v7, 20.0  ;;  %v3089_v29 = vadd.f32 %v1925_v54, %v2681_v57  ;;  %v870_v58 = vmul.f32 0.6931472, %v2305_v33  ;;  %v3109_v40 = vpop.eup %2306  ;;  %v987_v49 = vsel %vm571_vm10, %v2930_v39, %v867_v17 }
 0x1a2   :  { %v904_v39 = vadd.f32 1.0, %v3109_v40  ;;  %v882_v20 = vmul.f32 %v3040_v25, %v881_v59  ;;  %vm3134_vm12 = vcmp.lt.f32.partialorder %v883_v60, 0.0004427343  ;;  %v891_v9 = vmul.f32 %v3069_v52, %v890_v43 }
 0x1a3   :  { %v671_v30 = vmul.f32 1.442695, %v611_v19  ;;  %v1926_v11 = vpop.f32.mrb[60].mxu0  ;;  %v612_v34 = vmin.f32 %v3089_v29, 20.0  ;;  %v876_v38 = vsel %vm3097_vm9, %v873_v5, %v870_v58  ;;  %v898_v15 = vmul.f32 -0.5, %v3086_v26 }
 0x1a4   :  { %v1927_v57 = vpop.f32.mrb[61].mxu0  ;;  %v2309_v45 = vpop.eup %2308  ;;  %v988_v51 = vsel %vm572_vm11, %v2940_v53, %v876_v38  ;;  %vm893_vm14 = vcmp.lt.f32.partialorder %v892_v10, 0.0004427343  ;;  %v907_v19 = vmul.f32 -0.5, %v3109_v40  ;;  %vm574_vm15 = vcmp.gt.f32.partialorder %v2981_v35, 20.0 }
 0x1a5   :  { %2316 = vpow2.f32 %v671_v30  ;;  %v1928_v4 = vadd.f32 %v1927_v57, %v1926_v11  ;;  %v1929_v47 = vpop.f32.mrb[62].mxu0  ;;  %v673_v36 = vmul.f32 1.442695, %v612_v34  ;;  %v1009_v56 = vpack.c.bf16 %v988_v51, %v987_v49 }
 0x1a6   :  { %v1930_v37 = vpop.f32.mrb[63].mxu0  ;;  %v879_v0 = vmul.f32 0.6931472, %v2309_v45  ;;  %v901_v30 = vand.u32 2147483647, %v3086_v26  ;;  %v899_v32 = vadd.f32 1.0, %v898_v15 }
 0x1a7   :  { %v3115_v62 = vadd.f32 %v2468_v27, %v1928_v4  ;;  %v1931_v48 = vadd.f32 %v1930_v37, %v1929_v47  ;;  %2318 = vpow2.f32 %v673_v36  ;;  %v3124_v3 = vpop.eup %2310  ;;  %2104 = vmatprep.mubr.bf16.mxu1 %v1009_v56  ;;  %v910_v33 = vand.u32 2147483647, %v3109_v40 }
 0x1a8   :  { %2320 = vlog2.f32 %v895_v8  ;;  %v913_v6 = vadd.f32 1.0, %v3124_v3  ;;  %v885_v18 = vsel %vm3134_vm12, %v882_v20, %v879_v0  ;;  %v916_v24 = vmul.f32 -0.5, %v3124_v3 }
 0x1a9   :  { %v613_v46 = vmin.f32 %v3115_v62, 20.0  ;;  %v3122_v55 = vadd.f32 %v2468_v27, %v1931_v48  ;;  %v3129_v53 = vpop.eup %2312  ;;  %v989_v23 = vsel %vm573_vm13, %v2969_v22, %v885_v18  ;;  %v908_v5 = vadd.f32 1.0, %v907_v19 }
 0x1aa   :  { %v2315_v28 = vpop.eup %2314  ;;  %v922_v25 = vadd.f32 1.0, %v3129_v53  ;;  %v925_v34 = vmul.f32 -0.5, %v3129_v53  ;;  %v919_v1 = vand.u32 2147483647, %v3124_v3  ;;  %vm575_vm0 = vcmp.gt.f32.partialorder %v3004_v50, 20.0 }
 0x1ab   :  { %v675_v61 = vmul.f32 1.442695, %v613_v46  ;;  %v614_v63 = vmin.f32 %v3122_v55, 20.0  ;;  %v888_v54 = vmul.f32 0.6931472, %v2315_v28  ;;  %vm576_vm1 = vcmp.gt.f32.partialorder %v3010_v2, 20.0 }
 0x1ac   :  { %v928_v47 = vand.u32 2147483647, %v3129_v53  ;;  %vm577_vm2 = vcmp.gt.f32.partialorder %v3035_v14, 20.0  ;;  %v900_v36 = vmul.f32 %v3086_v26, %v899_v32  ;;  %vm3167_vm3 = vcmp.lt.f32.partialorder %v901_v30, 0.0004427343 }
 0x1ad   :  { %2322 = vpow2.f32 %v675_v61  ;;  %v677_v13 = vmul.f32 1.442695, %v614_v63  ;;  %v894_v52 = vsel %vm893_vm14, %v891_v9, %v888_v54  ;;  %v926_v41 = vadd.f32 1.0, %v925_v34 }
 0x1ae   :  { %2324 = vlog2.f32 %v904_v39  ;;  %v990_v12 = vsel %vm574_vm15, %v2981_v35, %v894_v52  ;;  %v917_v35 = vadd.f32 1.0, %v916_v24  ;;  %v909_v27 = vmul.f32 %v3109_v40, %v908_v5 }
 0x1af   :  { %v3140_v16 = vpop.eup %2316  ;;  %2326 = vpow2.f32 %v677_v13  ;;  %v1010_v31 = vpack.c.bf16 %v990_v12, %v989_v23  ;;  %vm3172_vm4 = vcmp.lt.f32.partialorder %v910_v33, 0.0004427343  ;;  %vm3176_vm5 = vcmp.lt.f32.partialorder %v919_v1, 0.0004427343 }
 0x1b0   :  { %2328 = vlog2.f32 %v913_v6  ;;  %v931_v11 = vadd.f32 1.0, %v3140_v16  ;;  %v934_v17 = vmul.f32 -0.5, %v3140_v16  ;;  %v918_v46 = vmul.f32 %v3124_v3, %v917_v35 }
 0x1b1   :  { %2330 = vlog2.f32 %v922_v25  ;;  %v3149_v21 = vpop.eup %2318  ;;  %2105 = vmatmul.mubr.bf16.gmra.mrb[4].mxu1 %v1010_v31  ;;  %vm3185_vm6 = vcmp.lt.f32.partialorder %v928_v47, 0.0004427343  ;;  %v927_v39 = vmul.f32 %v3129_v53, %v926_v41  ;;  %v937_v10 = vand.u32 2147483647, %v3140_v16 }
 0x1b2   :  { %v2321_v57 = vpop.eup %2320  ;;  %2332 = vlog2.f32 %v931_v11  ;;  %v940_v4 = vadd.f32 1.0, %v3149_v21  ;;  %v943_v56 = vmul.f32 -0.5, %v3149_v21  ;;  %v935_v60 = vadd.f32 1.0, %v934_v17 }
 0x1b3   :  { %v897_v22 = vmul.f32 0.6931472, %v2321_v57  ;;  %vm578_vm7 = vcmp.gt.f32.partialorder %v3051_v42, 20.0  ;;  %v946_v18 = vand.u32 2147483647, %v3149_v21  ;;  %vm579_vm10 = vcmp.gt.f32.partialorder %v3074_v7, 20.0 }
 0x1b4   :  { %2334 = vlog2.f32 %v940_v4  ;;  %v944_v44 = vadd.f32 1.0, %v943_v56  ;;  %vm938_vm8 = vcmp.lt.f32.partialorder %v937_v10, 0.0004427343  ;;  %vm580_vm11 = vcmp.gt.f32.partialorder %v3089_v29, 20.0 }
 0x1b5   :  { %v903_v26 = vsel %vm3167_vm3, %v900_v36, %v897_v22  ;;  %vm947_vm9 = vcmp.lt.f32.partialorder %v946_v18, 0.0004427343  ;;  %vm581_vm14 = vcmp.gt.f32.partialorder %v3115_v62, 20.0  ;;  %vm582_vm15 = vcmp.gt.f32.partialorder %v3122_v55, 20.0  ;;  %v2469_v36 = vld [vmem:[#allocation2 + $0x4] ss:$8 sps:$4 sm:$0xff]  }
 0x1b6   :  { %v991_v3 = vsel %vm575_vm0, %v3004_v50, %v903_v26  ;;  %v936_v50 = vmul.f32 %v3140_v16, %v935_v60  ;;  %v945_v30 = vmul.f32 %v3149_v21, %v944_v44 }
 0x1b7   :  { %v3163_v58 = vpop.eup %2322 }
 0x1b8   :  { %v2325_v8 = vpop.eup %2324  ;;  %v949_v45 = vadd.f32 1.0, %v3163_v58  ;;  %v952_v9 = vmul.f32 -0.5, %v3163_v58  ;;  %v955_v16 = vand.u32 2147483647, %v3163_v58 }
 0x1b9   :  { %v2327_v49 = vpop.eup %2326  ;;  %v906_v51 = vmul.f32 0.6931472, %v2325_v8 }
 0x1ba   :  { %v2329_v40 = vpop.eup %2328  ;;  %2336 = vlog2.f32 %v949_v45  ;;  %v958_v43 = vadd.f32 1.0, %v2327_v49  ;;  %v961_v19 = vmul.f32 -0.5, %v2327_v49  ;;  %v953_v11 = vadd.f32 1.0, %v952_v9 }
 0x1bb   :  { %v2331_v61 = vpop.eup %2330  ;;  %v912_v63 = vsel %vm3172_vm4, %v909_v27, %v906_v51  ;;  %v915_v0 = vmul.f32 0.6931472, %v2329_v40  ;;  %v964_v34 = vand.u32 2147483647, %v2327_v49  ;;  %vm956_vm12 = vcmp.lt.f32.partialorder %v955_v16, 0.0004427343 }
 0x1bc   :  { %v992_v13 = vsel %vm576_vm1, %v3010_v2, %v912_v63  ;;  %v924_v20 = vmul.f32 0.6931472, %v2331_v61  ;;  %2338 = vlog2.f32 %v958_v43  ;;  %v2333_v53 = vpop.eup %2332  ;;  %v954_v21 = vmul.f32 %v3163_v58, %v953_v11 }
 0x1bd   :  { %v1011_v6 = vpack.c.bf16 %v992_v13, %v991_v3  ;;  %v921_v28 = vsel %vm3176_vm5, %v918_v46, %v915_v0  ;;  %v933_v25 = vmul.f32 0.6931472, %v2333_v53  ;;  %vm965_vm13 = vcmp.lt.f32.partialorder %v964_v34, 0.0004427343  ;;  %v2473_v34 = vld [vmem:[#allocation2 + $0x24] ss:$8 sps:$4 sm:$0xff]  }
 0x1be   :  { %v930_v15 = vsel %vm3185_vm6, %v927_v39, %v924_v20  ;;  %v993_v2 = vsel %vm577_vm2, %v3035_v14, %v921_v28  ;;  %v2335_v52 = vpop.eup %2334 }
 0x1bf   :  { %2108 = vmatprep.mubr.bf16.mxu1 %v1011_v6  ;;  %v994_v54 = vsel %vm578_vm7, %v3051_v42, %v930_v15  ;;  %v939_v23 = vsel %vm938_vm8, %v936_v50, %v933_v25  ;;  %v942_v12 = vmul.f32 0.6931472, %v2335_v52  ;;  %v962_v42 = vadd.f32 1.0, %v961_v19 }
 0x1c0   :  { %v1012_v24 = vpack.c.bf16 %v994_v54, %v993_v2  ;;  %v995_v32 = vsel %vm579_vm10, %v3074_v7, %v939_v23 }
 0x1c1   :  { %v948_v14 = vsel %vm947_vm9, %v945_v30, %v942_v12  ;;  %v963_v35 = vmul.f32 %v2327_v49, %v962_v42 }
 0x1c2   :  { %2109 = vmatmul.mubr.bf16.gmra.mrb[8].mxu1 %v1012_v24  ;;  %v996_v33 = vsel %vm580_vm11, %v3089_v29, %v948_v14 }
 0x1c3   :  { %v1013_v57 = vpack.c.bf16 %v996_v33, %v995_v32  ;;  %v2471_v32 = vld [vmem:[#allocation2 + $0x14] ss:$8 sps:$4 sm:$0xff]   ;;  %v2472_v33 = vld [vmem:[#allocation2 + $0x10] ss:$8 sps:$4 sm:$0xff]  }
 0x1c4   :  { %v2337_v31 = vpop.eup %2336 }
 0x1c5   :  { %v951_v5 = vmul.f32 0.6931472, %v2337_v31  ;;  %2112 = vmatprep.mubr.bf16.mxu1 %v1013_v57  ;;  %v2470_v31 = vld [vmem:[#allocation2] ss:$8 sps:$4 sm:$0xff]  }
 0x1c6   :  { %v2339_v1 = vpop.eup %2338  ;;  %v2474_v57 = vld [vmem:[#allocation2 + $0x20] ss:$8 sps:$4 sm:$0xff]  }
 0x1c7   :  { %v957_v4 = vsel %vm956_vm12, %v954_v21, %v951_v5  ;;  %v960_v22 = vmul.f32 0.6931472, %v2339_v1  ;;  %v2475_v5 = vld [vmem:[#allocation2 + $0x34] ss:$8 sps:$4 sm:$0xff]   ;;  %v2476_v21 = vld [vmem:[#allocation2 + $0x30] ss:$8 sps:$4 sm:$0xff]  }
 0x1c8   :  { %v997_v7 = vsel %vm581_vm14, %v3115_v62, %v957_v4  ;;  %v2477_v1 = vld [vmem:[#allocation2 + $0x44] ss:$8 sps:$4 sm:$0xff]   ;;  %v2478_v4 = vld [vmem:[#allocation2 + $0x40] ss:$8 sps:$4 sm:$0xff]  }
 0x1c9   :  { %v966_v47 = vsel %vm965_vm13, %v963_v35, %v960_v22  ;;  %v2479_v22 = vld [vmem:[#allocation2 + $0x54] ss:$8 sps:$4 sm:$0xff]   ;;  %v2480_v35 = vld [vmem:[#allocation2 + $0x50] ss:$8 sps:$4 sm:$0xff]  }
 0x1ca   :  { %v998_v29 = vsel %vm582_vm15, %v3122_v55, %v966_v47  ;;  %v2481_v47 = vld [vmem:[#allocation2 + $0x64] ss:$8 sps:$4 sm:$0xff]  }
 0x1cb   :  { %v1014_v17 = vpack.c.bf16 %v998_v29, %v997_v7  ;;  %v2482_v7 = vld [vmem:[#allocation2 + $0x60] ss:$8 sps:$4 sm:$0xff]   ;;  %v2483_v29 = vld [vmem:[#allocation2 + $0x74] ss:$8 sps:$4 sm:$0xff]  }
 0x1cd   :  { %2113 = vmatmul.mubr.bf16.gmra.mrb[12].mxu1 %v1014_v17  ;;  %v2484_v17 = vld [vmem:[#allocation2 + $0x70] ss:$8 sps:$4 sm:$0xff]  }
 0x1ce   :  { %1295 = vmatprep.mubr.bf16.mxu1 %v2469_v36  ;;  %v2485_v36 = vld [vmem:[#allocation2 + $0x84] ss:$8 sps:$4 sm:$0xff]  }
 0x230   :  { %v2086_v58 = vpop.f32.mrb[64].mxu0 }
 0x231   :  { %v1113_v37 = vpop.f32.mrb[65].mxu0 }
 0x232   :  { %v2087_v41 = vpop.f32.mrb[66].mxu0 }
 0x233   :  { %v1241_v8 = vpack.c.bf16 %v2087_v41, %v2086_v58  ;;  %v1116_v27 = vpop.f32.mrb[67].mxu0  ;;  %v2486_v58 = vld [vmem:[#allocation2 + $0x80] ss:$8 sps:$4 sm:$0xff]   ;;  %v2488_v41 = vld [vmem:[#allocation2 + $0x90] ss:$8 sps:$4 sm:$0xff]  }
 0x234   :  { %v1240_v38 = vpack.c.bf16 %v1116_v27, %v1113_v37  ;;  %v2487_v37 = vld [vmem:[#allocation2 + $0x94] ss:$8 sps:$4 sm:$0xff]   ;;  %v2490_v27 = vld [vmem:[#allocation2 + $0xa0] ss:$8 sps:$4 sm:$0xff]  }
 0x242   :  { %v2090_v48 = vpop.f32.mrb[68].mxu0 }
 0x243   :  { %v1129_v45 = vpop.f32.mrb[69].mxu0 }
 0x244   :  { %v2091_v49 = vpop.f32.mrb[70].mxu0 }
 0x245   :  { %v1243_v26 = vpack.c.bf16 %v2091_v49, %v2090_v48  ;;  %v1132_v51 = vpop.f32.mrb[71].mxu0  ;;  %v2492_v48 = vld [vmem:[#allocation2 + $0xb0] ss:$8 sps:$4 sm:$0xff]   ;;  %v2494_v49 = vld [vmem:[#allocation2 + $0xc0] ss:$8 sps:$4 sm:$0xff]  }
 0x246   :  { %v1242_v46 = vpack.c.bf16 %v1132_v51, %v1129_v45  ;;  %v2493_v45 = vld [vmem:[#allocation2 + $0xc4] ss:$8 sps:$4 sm:$0xff]   ;;  %v2496_v51 = vld [vmem:[#allocation2 + $0xd0] ss:$8 sps:$4 sm:$0xff]  }
 0x254   :  { %v2094_v56 = vpop.f32.mrb[72].mxu0 }
 0x255   :  { %v1145_v62 = vpop.f32.mrb[73].mxu0 }
 0x256   :  { %v2095_v40 = vpop.f32.mrb[74].mxu0 }
 0x257   :  { %v1245_v55 = vpack.c.bf16 %v2095_v40, %v2094_v56  ;;  %v1148_v59 = vpop.f32.mrb[75].mxu0  ;;  %v2498_v56 = vld [vmem:[#allocation2 + $0xe0] ss:$8 sps:$4 sm:$0xff]   ;;  %v2500_v40 = vld [vmem:[#allocation2 + $0xf0] ss:$8 sps:$4 sm:$0xff]  }
 0x258   :  { %v1244_v60 = vpack.c.bf16 %v1148_v59, %v1145_v62  ;;  %v2499_v62 = vld [vmem:[#allocation2 + $0xf4] ss:$8 sps:$4 sm:$0xff]  }
 0x260   :  { %v2098_v43 = vpop.f32.mrb[76].mxu0 }
 0x261   :  { %v1161_v61 = vpop.f32.mrb[77].mxu0 }
 0x262   :  { %v2099_v63 = vpop.f32.mrb[78].mxu0 }
 0x263   :  { %v1247_v0 = vpack.c.bf16 %v2099_v63, %v2098_v43  ;;  %v1164_v39 = vpop.f32.mrb[79].mxu0 }
 0x264   :  { %v1246_v10 = vpack.c.bf16 %v1164_v39, %v1161_v61 }
 0x273   :  { %v2102_v3 = vpop.f32.mrb[0].mxu1 }
 0x274   :  { %v1177_v13 = vpop.f32.mrb[1].mxu1 }
 0x275   :  { %v2103_v20 = vpop.f32.mrb[2].mxu1 }
 0x276   :  { %v1249_v6 = vpack.c.bf16 %v2103_v20, %v2102_v3  ;;  %v1180_v28 = vpop.f32.mrb[3].mxu1 }
 0x277   :  { %v1248_v44 = vpack.c.bf16 %v1180_v28, %v1177_v13 }
 0x279   :  { %1956 = vmatprep.subr.bf16.mxu1 %v1248_v44 }
 0x27a   :  { %1957 = vmatpush3.bf16.msra.mxu1 %v1240_v38  ;;  %v2491_v38 = vld [vmem:[#allocation2 + $0xb4] ss:$8 sps:$4 sm:$0xff]  }
 0x27b   :  { %1958 = vmatprep.subr.bf16.mxu1 %v1249_v6 }
 0x27e   :  { %1959 = vmatpush3.bf16.msra.mxu1 %v1241_v8  ;;  %v2489_v8 = vld [vmem:[#allocation2 + $0xa4] ss:$8 sps:$4 sm:$0xff]  }
 0x284   :  { %v2106_v9 = vpop.f32.mrb[4].mxu1 }
 0x285   :  { %v1193_v53 = vpop.f32.mrb[5].mxu1 }
 0x286   :  { %v2107_v15 = vpop.f32.mrb[6].mxu1 }
 0x287   :  { %v1251_v50 = vpack.c.bf16 %v2107_v15, %v2106_v9  ;;  %v1196_v18 = vpop.f32.mrb[7].mxu1 }
 0x288   :  { %v1250_v2 = vpack.c.bf16 %v1196_v18, %v1193_v53 }
 0x28a   :  { %1960 = vmatprep.subr.bf16.mxu1 %v1250_v2 }
 0x28b   :  { %1961 = vmatpush3.bf16.msra.mxu1 %v1242_v46  ;;  %v2497_v46 = vld [vmem:[#allocation2 + $0xe4] ss:$8 sps:$4 sm:$0xff]  }
 0x28c   :  { %1962 = vmatprep.subr.bf16.mxu1 %v1251_v50 }
 0x28f   :  { %1963 = vmatpush3.bf16.msra.mxu1 %v1243_v26  ;;  %v2495_v26 = vld [vmem:[#allocation2 + $0xd4] ss:$8 sps:$4 sm:$0xff]  }
 0x295   :  { %v2110_v54 = vpop.f32.mrb[8].mxu1 }
 0x296   :  { %v1209_v25 = vpop.f32.mrb[9].mxu1 }
 0x297   :  { %v2111_v19 = vpop.f32.mrb[10].mxu1 }
 0x298   :  { %v1253_v52 = vpack.c.bf16 %v2111_v19, %v2110_v54  ;;  %v1212_v24 = vpop.f32.mrb[11].mxu1 }
 0x299   :  { %v1252_v23 = vpack.c.bf16 %v1212_v24, %v1209_v25 }
 0x29b   :  { %1964 = vmatprep.subr.bf16.mxu1 %v1252_v23 }
 0x29c   :  { %1965 = vmatpush3.bf16.msra.mxu1 %v1244_v60  ;;  %v3225_v60 = vld [vmem:[%s3534_s4] ss:$0 sm:$0xff]  ;;  %s2602_s4 = smov [#allocation8]  }
 0x29d   :  { %1966 = vmatprep.subr.bf16.mxu1 %v1253_v52  ;;  %s1749_s10 = sshll.u32 %s2602_s4, 4  ;;  %s1750_s10 = int_to_ptr.vmem [resolvable:$true] %s1749_s10 }
 0x29e   :  { %s2567_s11 = scalar_lea.vmem %s1750_s10, 4096  ;;  %p2572_p11 = scmp.lt.s32.totalorder %s1750_s10, %s1750_s10 }
 0x29f   :  { %p2568_p10 = scmp.ne.s32.totalorder %s1750_s10, %s2567_s11  ;;  %p2573_p12 = scmp.lt.s32.totalorder %s2567_s11, %s2567_s11 }
 0x2a0   :  { %1967 = vmatpush3.bf16.msra.mxu1 %v1245_v55  ;;  %v2114_v12 = vpop.f32.mrb[12].mxu1 }
 0x2a1   :  { %v1225_v30 = vpop.f32.mrb[13].mxu1  ;;  %p2574_p13 = por %p2573_p12, %p2572_p11 }
 0x2a2   :  { %v2115_v11 = vpop.f32.mrb[14].mxu1 }
 0x2a3   :  { %v1255_v16 = vpack.c.bf16 %v2115_v11, %v2114_v12  ;;  %v1228_v14 = vpop.f32.mrb[15].mxu1  ;;  %p2575_p0 = pnand %p2574_p13, %p2568_p10 }
 0x2a4   :  { %v1254_v42 = vpack.c.bf16 %v1228_v14, %v1225_v30 }
 0x2a6   :  { %1968 = vmatprep.subr.bf16.mxu1 %v1254_v42 }
 0x2a7   :  { %1969 = vmatpush3.bf16.msra.mxu1 %v1246_v10 }
 0x2a8   :  { %1970 = vmatprep.subr.bf16.mxu1 %v1255_v16 }
 0x2ab   :  { %1971 = vmatpush3.bf16.msra.mxu1 %v1247_v0 }
 0x2ae   :  { %1296 = vmatmul.mubr.bf16.vlgmr.msra.gmra.mrb[16].mxu1 %v2470_v31 }
 0x2af   :  { %1303 = vmatprep.mubr.bf16.mxu1 %v2471_v32 }
 0x2b6   :  { %1304 = vmatmul.mubr.bf16.gmra.mrb[20].mxu1 %v2472_v33 }
 0x2b7   :  { %1311 = vmatprep.mubr.bf16.mxu1 %v2473_v34 }
 0x2be   :  { %1312 = vmatmul.mubr.bf16.gmra.mrb[24].mxu1 %v2474_v57 }
 0x2bf   :  { %1319 = vmatprep.mubr.bf16.mxu1 %v2475_v5 }
 0x2c6   :  { %1320 = vmatmul.mubr.bf16.gmra.mrb[28].mxu1 %v2476_v21 }
 0x2c7   :  { %1327 = vmatprep.mubr.bf16.mxu1 %v2477_v1 }
 0x2ce   :  { %1328 = vmatmul.mubr.bf16.gmra.mrb[32].mxu1 %v2478_v4 }
 0x2cf   :  { %1335 = vmatprep.mubr.bf16.mxu1 %v2479_v22 }
 0x2d6   :  { %1336 = vmatmul.mubr.bf16.gmra.mrb[36].mxu1 %v2480_v35 }
 0x2d7   :  { %1343 = vmatprep.mubr.bf16.mxu1 %v2481_v47 }
 0x2de   :  { %1344 = vmatmul.mubr.bf16.gmra.mrb[40].mxu1 %v2482_v7 }
 0x2df   :  { %1351 = vmatprep.mubr.bf16.mxu1 %v2483_v29 }
 0x2e6   :  { %1352 = vmatmul.mubr.bf16.gmra.mrb[44].mxu1 %v2484_v17 }
 0x2e7   :  { %1359 = vmatprep.mubr.bf16.mxu1 %v2485_v36 }
 0x2ee   :  { %1360 = vmatmul.mubr.bf16.gmra.mrb[48].mxu1 %v2486_v58 }
 0x2ef   :  { %1367 = vmatprep.mubr.bf16.mxu1 %v2487_v37 }
 0x2f6   :  { %1368 = vmatmul.mubr.bf16.gmra.mrb[52].mxu1 %v2488_v41 }
 0x2f7   :  { %1375 = vmatprep.mubr.bf16.mxu1 %v2489_v8 }
 0x2fe   :  { %1376 = vmatmul.mubr.bf16.gmra.mrb[56].mxu1 %v2490_v27 }
 0x2ff   :  { %1383 = vmatprep.mubr.bf16.mxu1 %v2491_v38 }
 0x306   :  { %1384 = vmatmul.mubr.bf16.gmra.mrb[60].mxu1 %v2492_v48 }
 0x307   :  { %1391 = vmatprep.mubr.bf16.mxu1 %v2493_v45 }
 0x30e   :  { %1392 = vmatmul.mubr.bf16.gmra.mrb[64].mxu1 %v2494_v49 }
 0x30f   :  { %1399 = vmatprep.mubr.bf16.mxu1 %v2495_v26 }
 0x316   :  { %1400 = vmatmul.mubr.bf16.gmra.mrb[68].mxu1 %v2496_v51 }
 0x317   :  { %1407 = vmatprep.mubr.bf16.mxu1 %v2497_v46 }
 0x31e   :  { %1408 = vmatmul.mubr.bf16.gmra.mrb[72].mxu1 %v2498_v56 }
 0x31f   :  { %1415 = vmatprep.mubr.bf16.mxu1 %v2499_v62 }
 0x326   :  { %1416 = vmatmul.mubr.bf16.gmra.mrb[76].mxu1 %v2500_v40 }
 0x381   :  { %v1972_v55 = vpop.f32.mrb[16].mxu1 }
 0x382   :  { %v1973_v59 = vpop.f32.mrb[17].mxu1 }
 0x383   :  { %v1974_v43 = vadd.f32 %v1973_v59, %v1972_v55  ;;  %v1975_v61 = vpop.f32.mrb[18].mxu1 }
 0x384   :  { %v1976_v63 = vpop.f32.mrb[19].mxu1 }
 0x385   :  { %v1977_v0 = vadd.f32 %v1976_v63, %v1975_v61  ;;  %v3228_v39 = vadd.f32 %v1974_v43, %v3225_v60 }
 0x387   :  { %1424 = vmax.xlane.f32.xlu0 %v3228_v39  ;;  %v3232_v3 = vadd.f32 %v1977_v0, %v3225_v60 }
 0x389   :  { %v1978_v10 = vpop.f32.mrb[20].mxu1 }
 0x38a   :  { %v1979_v13 = vpop.f32.mrb[21].mxu1 }
 0x38b   :  { %v1980_v20 = vadd.f32 %v1979_v13, %v1978_v10  ;;  %v1981_v6 = vpop.f32.mrb[22].mxu1  ;;  %1426 = vmax.xlane.f32.xlu0 %v3232_v3 }
 0x38c   :  { %v1982_v28 = vpop.f32.mrb[23].mxu1 }
 0x38d   :  { %v1983_v44 = vadd.f32 %v1982_v28, %v1981_v6  ;;  %v3236_v9 = vadd.f32 %v1980_v20, %v3225_v60 }
 0x38f   :  { %1428 = vmax.xlane.f32.xlu1 %v3236_v9  ;;  %v3240_v15 = vadd.f32 %v1983_v44, %v3225_v60 }
 0x391   :  { %v1984_v53 = vpop.f32.mrb[24].mxu1 }
 0x392   :  { %v1985_v50 = vpop.f32.mrb[25].mxu1 }
 0x393   :  { %v1986_v18 = vadd.f32 %v1985_v50, %v1984_v53  ;;  %v1987_v2 = vpop.f32.mrb[26].mxu1  ;;  %1430 = vmax.xlane.f32.xlu1 %v3240_v15 }
 0x394   :  { %v1988_v54 = vpop.f32.mrb[27].mxu1 }
 0x395   :  { %v1989_v25 = vadd.f32 %v1988_v54, %v1987_v2  ;;  %v3244_v19 = vadd.f32 %v1986_v18, %v3225_v60 }
 0x397   :  { %1432 = vmax.xlane.f32.xlu0 %v3244_v19  ;;  %v3248_v52 = vadd.f32 %v1989_v25, %v3225_v60 }
 0x399   :  { %v1990_v24 = vpop.f32.mrb[28].mxu1  ;;  %1434 = vmax.xlane.f32.xlu1 %v3248_v52 }
 0x39a   :  { %v1991_v23 = vpop.f32.mrb[29].mxu1 }
 0x39b   :  { %v1992_v12 = vadd.f32 %v1991_v23, %v1990_v24  ;;  %v1993_v30 = vpop.f32.mrb[30].mxu1 }
 0x39c   :  { %v1994_v11 = vpop.f32.mrb[31].mxu1 }
 0x39d   :  { %v1995_v16 = vadd.f32 %v1994_v11, %v1993_v30  ;;  %v3252_v14 = vadd.f32 %v1992_v12, %v3225_v60 }
 0x39f   :  { %1436 = vmax.xlane.f32.xlu0 %v3252_v14  ;;  %v3256_v42 = vadd.f32 %v1995_v16, %v3225_v60 }
 0x3a1   :  { %v1996_v31 = vpop.f32.mrb[32].mxu1  ;;  %1438 = vmax.xlane.f32.xlu1 %v3256_v42 }
 0x3a2   :  { %v1997_v32 = vpop.f32.mrb[33].mxu1 }
 0x3a3   :  { %v1998_v33 = vadd.f32 %v1997_v32, %v1996_v31  ;;  %v1999_v34 = vpop.f32.mrb[34].mxu1 }
 0x3a4   :  { %v2000_v57 = vpop.f32.mrb[35].mxu1 }
 0x3a5   :  { %v2001_v5 = vadd.f32 %v2000_v57, %v1999_v34  ;;  %v3260_v21 = vadd.f32 %v1998_v33, %v3225_v60 }
 0x3a7   :  { %1440 = vmax.xlane.f32.xlu0 %v3260_v21  ;;  %v3264_v1 = vadd.f32 %v2001_v5, %v3225_v60 }
 0x3a9   :  { %v2002_v4 = vpop.f32.mrb[36].mxu1  ;;  %1442 = vmax.xlane.f32.xlu1 %v3264_v1 }
 0x3aa   :  { %v2003_v22 = vpop.f32.mrb[37].mxu1 }
 0x3ab   :  { %v2004_v35 = vadd.f32 %v2003_v22, %v2002_v4  ;;  %v2005_v47 = vpop.f32.mrb[38].mxu1 }
 0x3ac   :  { %v2006_v7 = vpop.f32.mrb[39].mxu1 }
 0x3ad   :  { %v2007_v29 = vadd.f32 %v2006_v7, %v2005_v47  ;;  %v3268_v17 = vadd.f32 %v2004_v35, %v3225_v60 }
 0x3af   :  { %1444 = vmax.xlane.f32.xlu0 %v3268_v17  ;;  %v3272_v36 = vadd.f32 %v2007_v29, %v3225_v60 }
 0x3b1   :  { %v2008_v58 = vpop.f32.mrb[40].mxu1  ;;  %1446 = vmax.xlane.f32.xlu1 %v3272_v36 }
 0x3b2   :  { %v2009_v37 = vpop.f32.mrb[41].mxu1 }
 0x3b3   :  { %v2010_v41 = vadd.f32 %v2009_v37, %v2008_v58  ;;  %v2011_v8 = vpop.f32.mrb[42].mxu1 }
 0x3b4   :  { %v2012_v27 = vpop.f32.mrb[43].mxu1 }
 0x3b5   :  { %v2013_v38 = vadd.f32 %v2012_v27, %v2011_v8  ;;  %v3276_v48 = vadd.f32 %v2010_v41, %v3225_v60 }
 0x3b7   :  { %1448 = vmax.xlane.f32.xlu0 %v3276_v48  ;;  %v3280_v45 = vadd.f32 %v2013_v38, %v3225_v60 }
 0x3b9   :  { %v2014_v49 = vpop.f32.mrb[44].mxu1  ;;  %1450 = vmax.xlane.f32.xlu1 %v3280_v45 }
 0x3ba   :  { %v2015_v26 = vpop.f32.mrb[45].mxu1 }
 0x3bb   :  { %v2016_v51 = vadd.f32 %v2015_v26, %v2014_v49  ;;  %v2017_v46 = vpop.f32.mrb[46].mxu1 }
 0x3bc   :  { %v2018_v56 = vpop.f32.mrb[47].mxu1 }
 0x3bd   :  { %v2019_v62 = vadd.f32 %v2018_v56, %v2017_v46  ;;  %v3284_v40 = vadd.f32 %v2016_v51, %v3225_v60 }
 0x3bf   :  { %1452 = vmax.xlane.f32.xlu0 %v3284_v40  ;;  %v3288_v55 = vadd.f32 %v2019_v62, %v3225_v60 }
 0x3c1   :  { %v2020_v59 = vpop.f32.mrb[48].mxu1  ;;  %1454 = vmax.xlane.f32.xlu1 %v3288_v55 }
 0x3c2   :  { %v2021_v43 = vpop.f32.mrb[49].mxu1 }
 0x3c3   :  { %v2022_v61 = vadd.f32 %v2021_v43, %v2020_v59  ;;  %v2023_v63 = vpop.f32.mrb[50].mxu1 }
 0x3c4   :  { %v2024_v0 = vpop.f32.mrb[51].mxu1 }
 0x3c5   :  { %v2025_v10 = vadd.f32 %v2024_v0, %v2023_v63  ;;  %v3292_v13 = vadd.f32 %v2022_v61, %v3225_v60 }
 0x3c7   :  { %1456 = vmax.xlane.f32.xlu0 %v3292_v13  ;;  %v3296_v20 = vadd.f32 %v2025_v10, %v3225_v60 }
 0x3c9   :  { %v2026_v6 = vpop.f32.mrb[52].mxu1  ;;  %1458 = vmax.xlane.f32.xlu1 %v3296_v20 }
 0x3ca   :  { %v2027_v28 = vpop.f32.mrb[53].mxu1 }
 0x3cb   :  { %v2028_v44 = vadd.f32 %v2027_v28, %v2026_v6  ;;  %v2029_v53 = vpop.f32.mrb[54].mxu1 }
 0x3cc   :  { %v2030_v50 = vpop.f32.mrb[55].mxu1 }
 0x3cd   :  { %v2031_v18 = vadd.f32 %v2030_v50, %v2029_v53  ;;  %v3300_v2 = vadd.f32 %v2028_v44, %v3225_v60 }
 0x3cf   :  { %1460 = vmax.xlane.f32.xlu0 %v3300_v2  ;;  %v3304_v54 = vadd.f32 %v2031_v18, %v3225_v60 }
 0x3d1   :  { %v2032_v25 = vpop.f32.mrb[56].mxu1  ;;  %1462 = vmax.xlane.f32.xlu1 %v3304_v54 }
 0x3d2   :  { %v2033_v24 = vpop.f32.mrb[57].mxu1 }
 0x3d3   :  { %v2034_v23 = vadd.f32 %v2033_v24, %v2032_v25  ;;  %v2035_v12 = vpop.f32.mrb[58].mxu1 }
 0x3d4   :  { %v2036_v30 = vpop.f32.mrb[59].mxu1 }
 0x3d5   :  { %v2037_v11 = vadd.f32 %v2036_v30, %v2035_v12  ;;  %v3308_v16 = vadd.f32 %v2034_v23, %v3225_v60 }
 0x3d7   :  { %1464 = vmax.xlane.f32.xlu0 %v3308_v16  ;;  %v3312_v31 = vadd.f32 %v2037_v11, %v3225_v60 }
 0x3d9   :  { %v2038_v32 = vpop.f32.mrb[60].mxu1  ;;  %1466 = vmax.xlane.f32.xlu1 %v3312_v31 }
 0x3da   :  { %v2039_v33 = vpop.f32.mrb[61].mxu1 }
 0x3db   :  { %v2040_v34 = vadd.f32 %v2039_v33, %v2038_v32  ;;  %v2041_v57 = vpop.f32.mrb[62].mxu1 }
 0x3dc   :  { %v2042_v5 = vpop.f32.mrb[63].mxu1 }
 0x3dd   :  { %v2043_v4 = vadd.f32 %v2042_v5, %v2041_v57  ;;  %v3316_v22 = vadd.f32 %v2040_v34, %v3225_v60 }
 0x3df   :  { %1468 = vmax.xlane.f32.xlu0 %v3316_v22  ;;  %v3320_v35 = vadd.f32 %v2043_v4, %v3225_v60 }
 0x3e1   :  { %v2044_v47 = vpop.f32.mrb[64].mxu1  ;;  %1470 = vmax.xlane.f32.xlu1 %v3320_v35 }
 0x3e2   :  { %v2045_v7 = vpop.f32.mrb[65].mxu1 }
 0x3e3   :  { %v2046_v29 = vadd.f32 %v2045_v7, %v2044_v47  ;;  %v2047_v58 = vpop.f32.mrb[66].mxu1 }
 0x3e4   :  { %v2048_v37 = vpop.f32.mrb[67].mxu1 }
 0x3e5   :  { %v2049_v41 = vadd.f32 %v2048_v37, %v2047_v58  ;;  %v3324_v8 = vadd.f32 %v2046_v29, %v3225_v60 }
 0x3e7   :  { %1472 = vmax.xlane.f32.xlu0 %v3324_v8  ;;  %v3328_v27 = vadd.f32 %v2049_v41, %v3225_v60 }
 0x3e9   :  { %v2050_v38 = vpop.f32.mrb[68].mxu1  ;;  %1474 = vmax.xlane.f32.xlu1 %v3328_v27 }
 0x3ea   :  { %v2051_v49 = vpop.f32.mrb[69].mxu1 }
 0x3eb   :  { %v2052_v26 = vadd.f32 %v2051_v49, %v2050_v38  ;;  %v2053_v51 = vpop.f32.mrb[70].mxu1 }
 0x3ec   :  { %v2054_v46 = vpop.f32.mrb[71].mxu1 }
 0x3ed   :  { %v2055_v56 = vadd.f32 %v2054_v46, %v2053_v51  ;;  %v3332_v62 = vadd.f32 %v2052_v26, %v3225_v60 }
 0x3ef   :  { %1476 = vmax.xlane.f32.xlu0 %v3332_v62  ;;  %v3336_v59 = vadd.f32 %v2055_v56, %v3225_v60 }
 0x3f1   :  { %v2056_v43 = vpop.f32.mrb[72].mxu1  ;;  %1478 = vmax.xlane.f32.xlu1 %v3336_v59 }
 0x3f2   :  { %v2057_v61 = vpop.f32.mrb[73].mxu1 }
 0x3f3   :  { %v2058_v63 = vadd.f32 %v2057_v61, %v2056_v43  ;;  %v2059_v0 = vpop.f32.mrb[74].mxu1 }
 0x3f4   :  { %v2060_v10 = vpop.f32.mrb[75].mxu1 }
 0x3f5   :  { %v2061_v6 = vadd.f32 %v2060_v10, %v2059_v0  ;;  %v3340_v28 = vadd.f32 %v2058_v63, %v3225_v60 }
 0x3f7   :  { %1480 = vmax.xlane.f32.xlu0 %v3340_v28  ;;  %v3344_v44 = vadd.f32 %v2061_v6, %v3225_v60 }
 0x3f9   :  { %v2062_v53 = vpop.f32.mrb[76].mxu1  ;;  %1482 = vmax.xlane.f32.xlu1 %v3344_v44 }
 0x3fa   :  { %v2063_v50 = vpop.f32.mrb[77].mxu1 }
 0x3fb   :  { %v2064_v18 = vadd.f32 %v2063_v50, %v2062_v53  ;;  %v2065_v25 = vpop.f32.mrb[78].mxu1 }
 0x3fc   :  { %v2066_v24 = vpop.f32.mrb[79].mxu1 }
 0x3fd   :  { %v2067_v23 = vadd.f32 %v2066_v24, %v2065_v25  ;;  %v3348_v12 = vadd.f32 %v2064_v18, %v3225_v60 }
 0x3ff   :  { %1484 = vmax.xlane.f32.xlu0 %v3348_v12  ;;  %v3352_v30 = vadd.f32 %v2067_v23, %v3225_v60 }
 0x401   :  { %1486 = vmax.xlane.f32.xlu1 %v3352_v30 }
 0x414   :  { %v1425_v11 = vpop.xlane.xlu0 %1424 }
 0x415   :  { %v1488_v32 = vsub.f32 %v3228_v39, %v1425_v11 }
 0x417   :  { %v1520_v33 = vmul.f32 1.442695, %v1488_v32 }
 0x418   :  { %v1427_v34 = vpop.xlane.xlu0 %1426 }
 0x419   :  { %2340 = vpow2.f32 %v1520_v33  ;;  %v1489_v57 = vsub.f32 %v3232_v3, %v1427_v34 }
 0x41b   :  { %v1522_v5 = vmul.f32 1.442695, %v1489_v57 }
 0x41c   :  { %v1429_v4 = vpop.xlane.xlu1 %1428 }
 0x41d   :  { %2342 = vpow2.f32 %v1522_v5  ;;  %v1490_v47 = vsub.f32 %v3236_v9, %v1429_v4 }
 0x41f   :  { %v1524_v7 = vmul.f32 1.442695, %v1490_v47 }
 0x420   :  { %v1431_v29 = vpop.xlane.xlu1 %1430 }
 0x421   :  { %2344 = vpow2.f32 %v1524_v7  ;;  %v1491_v60 = vsub.f32 %v3240_v15, %v1431_v29 }
 0x423   :  { %v3359_v58 = vpop.eup %2340  ;;  %v1526_v37 = vmul.f32 1.442695, %v1491_v60 }
 0x424   :  { %1584 = vadd.xlane.f32.xlu0 %v3359_v58  ;;  %v1433_v39 = vpop.xlane.xlu0 %1432 }
 0x425   :  { %2346 = vpow2.f32 %v1526_v37  ;;  %v1492_v41 = vsub.f32 %v3244_v19, %v1433_v39 }
 0x426   :  { %v1435_v3 = vpop.xlane.xlu1 %1434 }
 0x427   :  { %v3363_v38 = vpop.eup %2342  ;;  %v1528_v49 = vmul.f32 1.442695, %v1492_v41  ;;  %v1493_v9 = vsub.f32 %v3248_v52, %v1435_v3 }
 0x428   :  { %1586 = vadd.xlane.f32.xlu1 %v3363_v38 }
 0x429   :  { %2348 = vpow2.f32 %v1528_v49  ;;  %v1530_v26 = vmul.f32 1.442695, %v1493_v9 }
 0x42b   :  { %v3367_v15 = vpop.eup %2344  ;;  %2350 = vpow2.f32 %v1530_v26 }
 0x42c   :  { %1588 = vadd.xlane.f32.xlu0 %v3367_v15  ;;  %v1437_v51 = vpop.xlane.xlu0 %1436 }
 0x42d   :  { %v1494_v46 = vsub.f32 %v3252_v14, %v1437_v51 }
 0x42e   :  { %v1439_v56 = vpop.xlane.xlu1 %1438 }
 0x42f   :  { %v3371_v19 = vpop.eup %2346  ;;  %v1532_v43 = vmul.f32 1.442695, %v1494_v46  ;;  %v1495_v61 = vsub.f32 %v3256_v42, %v1439_v56 }
 0x430   :  { %1590 = vadd.xlane.f32.xlu1 %v3371_v19 }
 0x431   :  { %2352 = vpow2.f32 %v1532_v43  ;;  %v1534_v52 = vmul.f32 1.442695, %v1495_v61 }
 0x433   :  { %v3375_v63 = vpop.eup %2348  ;;  %2354 = vpow2.f32 %v1534_v52 }
 0x434   :  { %1592 = vadd.xlane.f32.xlu0 %v3375_v63  ;;  %v1441_v0 = vpop.xlane.xlu0 %1440 }
 0x435   :  { %v3378_v10 = vpop.eup %2350  ;;  %v1496_v14 = vsub.f32 %v3260_v21, %v1441_v0 }
 0x436   :  { %v1443_v6 = vpop.xlane.xlu1 %1442  ;;  %1594 = vadd.xlane.f32.xlu1 %v3378_v10 }
 0x437   :  { %v1536_v53 = vmul.f32 1.442695, %v1496_v14  ;;  %v1497_v42 = vsub.f32 %v3264_v1, %v1443_v6 }
 0x439   :  { %2356 = vpow2.f32 %v1536_v53  ;;  %v1538_v50 = vmul.f32 1.442695, %v1497_v42 }
 0x43b   :  { %v3383_v18 = vpop.eup %2352  ;;  %2358 = vpow2.f32 %v1538_v50 }
 0x43c   :  { %1596 = vadd.xlane.f32.xlu0 %v3383_v18  ;;  %v1445_v25 = vpop.xlane.xlu0 %1444 }
 0x43d   :  { %v3386_v24 = vpop.eup %2354  ;;  %v1498_v23 = vsub.f32 %v3268_v17, %v1445_v25 }
 0x43e   :  { %v1447_v11 = vpop.xlane.xlu1 %1446  ;;  %1598 = vadd.xlane.f32.xlu1 %v3386_v24 }
 0x43f   :  { %v1540_v21 = vmul.f32 1.442695, %v1498_v23  ;;  %v1499_v32 = vsub.f32 %v3272_v36, %v1447_v11 }
 0x441   :  { %2360 = vpow2.f32 %v1540_v21  ;;  %v1542_v1 = vmul.f32 1.442695, %v1499_v32 }
 0x443   :  { %v3391_v33 = vpop.eup %2356  ;;  %2362 = vpow2.f32 %v1542_v1 }
 0x444   :  { %1600 = vadd.xlane.f32.xlu0 %v3391_v33  ;;  %v1449_v34 = vpop.xlane.xlu0 %1448 }
 0x445   :  { %v3394_v57 = vpop.eup %2358  ;;  %v1500_v5 = vsub.f32 %v3276_v48, %v1449_v34 }
 0x446   :  { %v1451_v4 = vpop.xlane.xlu1 %1450  ;;  %1602 = vadd.xlane.f32.xlu1 %v3394_v57 }
 0x447   :  { %v1544_v17 = vmul.f32 1.442695, %v1500_v5  ;;  %v1501_v47 = vsub.f32 %v3280_v45, %v1451_v4 }
 0x449   :  { %2364 = vpow2.f32 %v1544_v17  ;;  %v1546_v36 = vmul.f32 1.442695, %v1501_v47 }
 0x44b   :  { %v3399_v7 = vpop.eup %2360  ;;  %2366 = vpow2.f32 %v1546_v36 }
 0x44c   :  { %1604 = vadd.xlane.f32.xlu0 %v3399_v7  ;;  %v1453_v29 = vpop.xlane.xlu0 %1452 }
 0x44d   :  { %v3402_v60 = vpop.eup %2362  ;;  %v1502_v37 = vsub.f32 %v3284_v40, %v1453_v29 }
 0x44e   :  { %v1455_v39 = vpop.xlane.xlu1 %1454  ;;  %1606 = vadd.xlane.f32.xlu1 %v3402_v60 }
 0x44f   :  { %v1548_v48 = vmul.f32 1.442695, %v1502_v37  ;;  %v1503_v41 = vsub.f32 %v3288_v55, %v1455_v39 }
 0x451   :  { %2368 = vpow2.f32 %v1548_v48  ;;  %v1550_v45 = vmul.f32 1.442695, %v1503_v41 }
 0x453   :  { %v3407_v3 = vpop.eup %2364  ;;  %2370 = vpow2.f32 %v1550_v45 }
 0x454   :  { %1608 = vadd.xlane.f32.xlu0 %v3407_v3  ;;  %v1457_v49 = vpop.xlane.xlu0 %1456 }
 0x455   :  { %v3410_v9 = vpop.eup %2366  ;;  %v1504_v26 = vsub.f32 %v3292_v13, %v1457_v49 }
 0x456   :  { %v1459_v51 = vpop.xlane.xlu1 %1458  ;;  %1610 = vadd.xlane.f32.xlu1 %v3410_v9 }
 0x457   :  { %v1552_v40 = vmul.f32 1.442695, %v1504_v26  ;;  %v1505_v46 = vsub.f32 %v3296_v20, %v1459_v51 }
 0x459   :  { %2372 = vpow2.f32 %v1552_v40  ;;  %v1554_v55 = vmul.f32 1.442695, %v1505_v46 }
 0x45b   :  { %v3415_v56 = vpop.eup %2368  ;;  %2374 = vpow2.f32 %v1554_v55 }
 0x45c   :  { %1612 = vadd.xlane.f32.xlu0 %v3415_v56  ;;  %v1461_v43 = vpop.xlane.xlu0 %1460 }
 0x45d   :  { %v3418_v61 = vpop.eup %2370  ;;  %v1506_v52 = vsub.f32 %v3300_v2, %v1461_v43 }
 0x45e   :  { %v1463_v0 = vpop.xlane.xlu1 %1462  ;;  %1614 = vadd.xlane.f32.xlu1 %v3418_v61 }
 0x45f   :  { %v1556_v13 = vmul.f32 1.442695, %v1506_v52  ;;  %v1507_v14 = vsub.f32 %v3304_v54, %v1463_v0 }
 0x461   :  { %2376 = vpow2.f32 %v1556_v13  ;;  %v1558_v20 = vmul.f32 1.442695, %v1507_v14 }
 0x463   :  { %v3423_v6 = vpop.eup %2372  ;;  %2378 = vpow2.f32 %v1558_v20 }
 0x464   :  { %1616 = vadd.xlane.f32.xlu0 %v3423_v6  ;;  %v1465_v53 = vpop.xlane.xlu0 %1464 }
 0x465   :  { %v3426_v42 = vpop.eup %2374  ;;  %v1508_v50 = vsub.f32 %v3308_v16, %v1465_v53 }
 0x466   :  { %v1467_v25 = vpop.xlane.xlu1 %1466  ;;  %1618 = vadd.xlane.f32.xlu1 %v3426_v42 }
 0x467   :  { %v1560_v2 = vmul.f32 1.442695, %v1508_v50  ;;  %v1509_v23 = vsub.f32 %v3312_v31, %v1467_v25 }
 0x469   :  { %2380 = vpow2.f32 %v1560_v2  ;;  %v1562_v54 = vmul.f32 1.442695, %v1509_v23 }
 0x46b   :  { %v3431_v11 = vpop.eup %2376  ;;  %2382 = vpow2.f32 %v1562_v54 }
 0x46c   :  { %1620 = vadd.xlane.f32.xlu0 %v3431_v11  ;;  %v1469_v21 = vpop.xlane.xlu0 %1468 }
 0x46d   :  { %v3434_v32 = vpop.eup %2378  ;;  %v1510_v1 = vsub.f32 %v3316_v22, %v1469_v21 }
 0x46e   :  { %v1471_v34 = vpop.xlane.xlu1 %1470  ;;  %1622 = vadd.xlane.f32.xlu1 %v3434_v32 }
 0x46f   :  { %v1564_v16 = vmul.f32 1.442695, %v1510_v1  ;;  %v1511_v5 = vsub.f32 %v3320_v35, %v1471_v34 }
 0x471   :  { %2384 = vpow2.f32 %v1564_v16  ;;  %v1566_v31 = vmul.f32 1.442695, %v1511_v5 }
 0x473   :  { %v3439_v4 = vpop.eup %2380  ;;  %2386 = vpow2.f32 %v1566_v31 }
 0x474   :  { %1624 = vadd.xlane.f32.xlu0 %v3439_v4  ;;  %v1473_v17 = vpop.xlane.xlu0 %1472 }
 0x475   :  { %v3442_v47 = vpop.eup %2382  ;;  %v1512_v36 = vsub.f32 %v3324_v8, %v1473_v17 }
 0x476   :  { %v1475_v29 = vpop.xlane.xlu1 %1474  ;;  %1626 = vadd.xlane.f32.xlu1 %v3442_v47 }
 0x477   :  { %v1568_v22 = vmul.f32 1.442695, %v1512_v36  ;;  %v1513_v37 = vsub.f32 %v3328_v27, %v1475_v29 }
 0x479   :  { %2388 = vpow2.f32 %v1568_v22  ;;  %v1570_v35 = vmul.f32 1.442695, %v1513_v37 }
 0x47b   :  { %v3447_v39 = vpop.eup %2384  ;;  %2390 = vpow2.f32 %v1570_v35 }
 0x47c   :  { %1628 = vadd.xlane.f32.xlu0 %v3447_v39  ;;  %v1477_v48 = vpop.xlane.xlu0 %1476 }
 0x47d   :  { %v3450_v41 = vpop.eup %2386  ;;  %v1514_v45 = vsub.f32 %v3332_v62, %v1477_v48 }
 0x47e   :  { %v1479_v49 = vpop.xlane.xlu1 %1478  ;;  %1630 = vadd.xlane.f32.xlu1 %v3450_v41 }
 0x47f   :  { %v1572_v8 = vmul.f32 1.442695, %v1514_v45  ;;  %v1515_v26 = vsub.f32 %v3336_v59, %v1479_v49 }
 0x481   :  { %2392 = vpow2.f32 %v1572_v8  ;;  %v1574_v27 = vmul.f32 1.442695, %v1515_v26 }
 0x483   :  { %v3455_v51 = vpop.eup %2388  ;;  %2394 = vpow2.f32 %v1574_v27 }
 0x484   :  { %1632 = vadd.xlane.f32.xlu0 %v3455_v51  ;;  %v1481_v40 = vpop.xlane.xlu0 %1480 }
 0x485   :  { %v3458_v46 = vpop.eup %2390  ;;  %v1516_v55 = vsub.f32 %v3340_v28, %v1481_v40 }
 0x486   :  { %v1483_v43 = vpop.xlane.xlu1 %1482  ;;  %1634 = vadd.xlane.f32.xlu1 %v3458_v46 }
 0x487   :  { %v1576_v62 = vmul.f32 1.442695, %v1516_v55  ;;  %v1517_v52 = vsub.f32 %v3344_v44, %v1483_v43 }
 0x489   :  { %2396 = vpow2.f32 %v1576_v62  ;;  %v1578_v59 = vmul.f32 1.442695, %v1517_v52 }
 0x48b   :  { %v3463_v0 = vpop.eup %2392  ;;  %2398 = vpow2.f32 %v1578_v59 }
 0x48c   :  { %1636 = vadd.xlane.f32.xlu0 %v3463_v0  ;;  %v1485_v13 = vpop.xlane.xlu0 %1484 }
 0x48d   :  { %v3466_v14 = vpop.eup %2394  ;;  %v1518_v20 = vsub.f32 %v3348_v12, %v1485_v13 }
 0x48e   :  { %v1487_v53 = vpop.xlane.xlu1 %1486  ;;  %1638 = vadd.xlane.f32.xlu1 %v3466_v14 }
 0x48f   :  { %v1580_v28 = vmul.f32 1.442695, %v1518_v20  ;;  %v1519_v50 = vsub.f32 %v3352_v30, %v1487_v53 }
 0x491   :  { %2400 = vpow2.f32 %v1580_v28  ;;  %v1582_v44 = vmul.f32 1.442695, %v1519_v50 }
 0x493   :  { %v3471_v25 = vpop.eup %2396  ;;  %2402 = vpow2.f32 %v1582_v44 }
 0x494   :  { %1640 = vadd.xlane.f32.xlu0 %v3471_v25 }
 0x495   :  { %v3474_v2 = vpop.eup %2398 }
 0x496   :  { %1642 = vadd.xlane.f32.xlu1 %v3474_v2 }
 0x49b   :  { %v3477_v23 = vpop.eup %2400 }
 0x49c   :  { %1644 = vadd.xlane.f32.xlu0 %v3477_v23 }
 0x49d   :  { %v3480_v12 = vpop.eup %2402 }
 0x49e   :  { %1646 = vadd.xlane.f32.xlu1 %v3480_v12 }
 0x4b1   :  { %v1585_v30 = vpop.xlane.xlu0 %1584 }
 0x4b2   :  { %2404 = vrcp.f32 %v1585_v30 }
 0x4b5   :  { %v1587_v54 = vpop.xlane.xlu1 %1586 }
 0x4b6   :  { %2406 = vrcp.f32 %v1587_v54 }
 0x4b9   :  { %v1589_v21 = vpop.xlane.xlu0 %1588 }
 0x4ba   :  { %2408 = vrcp.f32 %v1589_v21 }
 0x4bc   :  { %v2405_v1 = vpop.eup %2404 }
 0x4bd   :  { %v1680_v34 = vmul.f32 %v2405_v1, %v3359_v58  ;;  %v1591_v16 = vpop.xlane.xlu1 %1590 }
 0x4be   :  { %2410 = vrcp.f32 %v1591_v16 }
 0x4bf   :  { %1712 = vst [vmem:[#allocation8] sm:$0xff] %v1680_v34 }
 0x4c0   :  { %v2407_v5 = vpop.eup %2406 }
 0x4c1   :  { %v1681_v31 = vmul.f32 %v2407_v5, %v3363_v38  ;;  %v1593_v17 = vpop.xlane.xlu0 %1592 }
 0x4c2   :  { %2412 = vrcp.f32 %v1593_v17 }
 0x4c3   :  { %1713 = vst [vmem:[#allocation8 + $0x8] sm:$0xff] %v1681_v31  ;;  %v1595_v36 = vpop.xlane.xlu1 %1594 }
 0x4c4   :  { %v2409_v29 = vpop.eup %2408  ;;  %2414 = vrcp.f32 %v1595_v36 }
 0x4c5   :  { %v1682_v22 = vmul.f32 %v2409_v29, %v3367_v15 }
 0x4c7   :  { %1714 = vst [vmem:[#allocation8 + $0x10] sm:$0xff] %v1682_v22 }
 0x4c8   :  { %v2411_v37 = vpop.eup %2410 }
 0x4c9   :  { %v1683_v35 = vmul.f32 %v2411_v37, %v3371_v19  ;;  %v1597_v48 = vpop.xlane.xlu0 %1596 }
 0x4ca   :  { %2416 = vrcp.f32 %v1597_v48 }
 0x4cb   :  { %1715 = vst [vmem:[#allocation8 + $0x18] sm:$0xff] %v1683_v35  ;;  %v1599_v58 = vpop.xlane.xlu1 %1598 }
 0x4cc   :  { %v2413_v45 = vpop.eup %2412  ;;  %2418 = vrcp.f32 %v1599_v58 }
 0x4cd   :  { %v1684_v38 = vmul.f32 %v2413_v45, %v3375_v63 }
 0x4ce   :  { %v2415_v49 = vpop.eup %2414 }
 0x4cf   :  { %1716 = vst [vmem:[#allocation8 + $0x20] sm:$0xff] %v1684_v38  ;;  %v1685_v8 = vmul.f32 %v2415_v49, %v3378_v10 }
 0x4d1   :  { %1717 = vst [vmem:[#allocation8 + $0x28] sm:$0xff] %v1685_v8  ;;  %v1601_v26 = vpop.xlane.xlu0 %1600 }
 0x4d2   :  { %2420 = vrcp.f32 %v1601_v26 }
 0x4d3   :  { %v1603_v15 = vpop.xlane.xlu1 %1602 }
 0x4d4   :  { %v2417_v27 = vpop.eup %2416  ;;  %2422 = vrcp.f32 %v1603_v15 }
 0x4d5   :  { %v1686_v19 = vmul.f32 %v2417_v27, %v3383_v18 }
 0x4d6   :  { %v2419_v40 = vpop.eup %2418 }
 0x4d7   :  { %1718 = vst [vmem:[#allocation8 + $0x30] sm:$0xff] %v1686_v19  ;;  %v1687_v55 = vmul.f32 %v2419_v40, %v3386_v24 }
 0x4d9   :  { %1719 = vst [vmem:[#allocation8 + $0x38] sm:$0xff] %v1687_v55  ;;  %v1605_v43 = vpop.xlane.xlu0 %1604 }
 0x4da   :  { %2424 = vrcp.f32 %v1605_v43 }
 0x4db   :  { %v1607_v63 = vpop.xlane.xlu1 %1606 }
 0x4dc   :  { %v2421_v62 = vpop.eup %2420  ;;  %2426 = vrcp.f32 %v1607_v63 }
 0x4dd   :  { %v1688_v10 = vmul.f32 %v2421_v62, %v3391_v33 }
 0x4de   :  { %v2423_v52 = vpop.eup %2422 }
 0x4df   :  { %1720 = vst [vmem:[#allocation8 + $0x40] sm:$0xff] %v1688_v10  ;;  %v1689_v59 = vmul.f32 %v2423_v52, %v3394_v57 }
 0x4e1   :  { %1721 = vst [vmem:[#allocation8 + $0x48] sm:$0xff] %v1689_v59  ;;  %v1609_v13 = vpop.xlane.xlu0 %1608 }
 0x4e2   :  { %2428 = vrcp.f32 %v1609_v13 }
 0x4e3   :  { %v1611_v18 = vpop.xlane.xlu1 %1610 }
 0x4e4   :  { %v2425_v20 = vpop.eup %2424  ;;  %2430 = vrcp.f32 %v1611_v18 }
 0x4e5   :  { %v1690_v24 = vmul.f32 %v2425_v20, %v3399_v7 }
 0x4e6   :  { %v2427_v53 = vpop.eup %2426 }
 0x4e7   :  { %1722 = vst [vmem:[#allocation8 + $0x50] sm:$0xff] %v1690_v24  ;;  %v1691_v28 = vmul.f32 %v2427_v53, %v3402_v60 }
 0x4e9   :  { %1723 = vst [vmem:[#allocation8 + $0x58] sm:$0xff] %v1691_v28  ;;  %v1613_v50 = vpop.xlane.xlu0 %1612 }
 0x4ea   :  { %2432 = vrcp.f32 %v1613_v50 }
 0x4eb   :  { %v1615_v33 = vpop.xlane.xlu1 %1614 }
 0x4ec   :  { %v2429_v44 = vpop.eup %2428  ;;  %2434 = vrcp.f32 %v1615_v33 }
 0x4ed   :  { %v1692_v57 = vmul.f32 %v2429_v44, %v3407_v3 }
 0x4ee   :  { %v2431_v30 = vpop.eup %2430 }
 0x4ef   :  { %1724 = vst [vmem:[#allocation8 + $0x60] sm:$0xff] %v1692_v57  ;;  %v1693_v54 = vmul.f32 %v2431_v30, %v3410_v9 }
 0x4f1   :  { %1725 = vst [vmem:[#allocation8 + $0x68] sm:$0xff] %v1693_v54  ;;  %v1617_v21 = vpop.xlane.xlu0 %1616 }
 0x4f2   :  { %2436 = vrcp.f32 %v1617_v21 }
 0x4f3   :  { %v1619_v7 = vpop.xlane.xlu1 %1618 }
 0x4f4   :  { %v2433_v1 = vpop.eup %2432  ;;  %2438 = vrcp.f32 %v1619_v7 }
 0x4f5   :  { %v1694_v60 = vmul.f32 %v2433_v1, %v3415_v56 }
 0x4f6   :  { %v2435_v34 = vpop.eup %2434 }
 0x4f7   :  { %1726 = vst [vmem:[#allocation8 + $0x70] sm:$0xff] %v1694_v60  ;;  %v1695_v16 = vmul.f32 %v2435_v34, %v3418_v61 }
 0x4f9   :  { %1727 = vst [vmem:[#allocation8 + $0x78] sm:$0xff] %v1695_v16  ;;  %v1621_v5 = vpop.xlane.xlu0 %1620 }
 0x4fa   :  { %2440 = vrcp.f32 %v1621_v5 }
 0x4fb   :  { %v1623_v3 = vpop.xlane.xlu1 %1622 }
 0x4fc   :  { %v2437_v31 = vpop.eup %2436  ;;  %2442 = vrcp.f32 %v1623_v3 }
 0x4fd   :  { %v1696_v9 = vmul.f32 %v2437_v31, %v3423_v6 }
 0x4fe   :  { %v2439_v17 = vpop.eup %2438 }
 0x4ff   :  { %1728 = vst [vmem:[#allocation8 + $0x80] sm:$0xff] %v1696_v9  ;;  %v1697_v36 = vmul.f32 %v2439_v17, %v3426_v42 }
 0x501   :  { %1729 = vst [vmem:[#allocation8 + $0x88] sm:$0xff] %v1697_v36  ;;  %v1625_v29 = vpop.xlane.xlu0 %1624 }
 0x502   :  { %2444 = vrcp.f32 %v1625_v29 }
 0x503   :  { %v1627_v56 = vpop.xlane.xlu1 %1626 }
 0x504   :  { %v2441_v22 = vpop.eup %2440  ;;  %2446 = vrcp.f32 %v1627_v56 }
 0x505   :  { %v1698_v61 = vmul.f32 %v2441_v22, %v3431_v11 }
 0x506   :  { %v2443_v37 = vpop.eup %2442 }
 0x507   :  { %1730 = vst [vmem:[#allocation8 + $0x90] sm:$0xff] %v1698_v61  ;;  %v1699_v35 = vmul.f32 %v2443_v37, %v3434_v32 }
 0x509   :  { %1731 = vst [vmem:[#allocation8 + $0x98] sm:$0xff] %v1699_v35  ;;  %v1629_v48 = vpop.xlane.xlu0 %1628 }
 0x50a   :  { %2448 = vrcp.f32 %v1629_v48 }
 0x50b   :  { %v1631_v6 = vpop.xlane.xlu1 %1630 }
 0x50c   :  { %v2445_v58 = vpop.eup %2444  ;;  %2450 = vrcp.f32 %v1631_v6 }
 0x50d   :  { %v1700_v42 = vmul.f32 %v2445_v58, %v3439_v4 }
 0x50e   :  { %v2447_v45 = vpop.eup %2446 }
 0x50f   :  { %1732 = vst [vmem:[#allocation8 + $0xa0] sm:$0xff] %v1700_v42  ;;  %v1701_v38 = vmul.f32 %v2447_v45, %v3442_v47 }
 0x511   :  { %1733 = vst [vmem:[#allocation8 + $0xa8] sm:$0xff] %v1701_v38  ;;  %v1633_v49 = vpop.xlane.xlu0 %1632 }
 0x512   :  { %2452 = vrcp.f32 %v1633_v49 }
 0x513   :  { %v1635_v11 = vpop.xlane.xlu1 %1634 }
 0x514   :  { %v2449_v8 = vpop.eup %2448  ;;  %2454 = vrcp.f32 %v1635_v11 }
 0x515   :  { %v1702_v32 = vmul.f32 %v2449_v8, %v3447_v39 }
 0x516   :  { %v2451_v26 = vpop.eup %2450 }
 0x517   :  { %1734 = vst [vmem:[#allocation8 + $0xb0] sm:$0xff] %v1702_v32  ;;  %v1703_v15 = vmul.f32 %v2451_v26, %v3450_v41 }
 0x519   :  { %1735 = vst [vmem:[#allocation8 + $0xb8] sm:$0xff] %v1703_v15  ;;  %v1637_v27 = vpop.xlane.xlu0 %1636 }
 0x51a   :  { %2456 = vrcp.f32 %v1637_v27 }
 0x51b   :  { %v1639_v4 = vpop.xlane.xlu1 %1638 }
 0x51c   :  { %v2453_v19 = vpop.eup %2452  ;;  %2458 = vrcp.f32 %v1639_v4 }
 0x51d   :  { %v1704_v47 = vmul.f32 %v2453_v19, %v3455_v51 }
 0x51e   :  { %v2455_v40 = vpop.eup %2454 }
 0x51f   :  { %1736 = vst [vmem:[#allocation8 + $0xc0] sm:$0xff] %v1704_v47  ;;  %v1705_v55 = vmul.f32 %v2455_v40, %v3458_v46 }
 0x521   :  { %1737 = vst [vmem:[#allocation8 + $0xc8] sm:$0xff] %v1705_v55  ;;  %v1641_v43 = vpop.xlane.xlu0 %1640 }
 0x522   :  { %2460 = vrcp.f32 %v1641_v43 }
 0x523   :  { %v1643_v39 = vpop.xlane.xlu1 %1642 }
 0x524   :  { %v2457_v63 = vpop.eup %2456  ;;  %2462 = vrcp.f32 %v1643_v39 }
 0x525   :  { %v1706_v41 = vmul.f32 %v2457_v63, %v3463_v0 }
 0x526   :  { %v2459_v62 = vpop.eup %2458 }
 0x527   :  { %1738 = vst [vmem:[#allocation8 + $0xd0] sm:$0xff] %v1706_v41  ;;  %v1707_v10 = vmul.f32 %v2459_v62, %v3466_v14 }
 0x529   :  { %1739 = vst [vmem:[#allocation8 + $0xd8] sm:$0xff] %v1707_v10  ;;  %v1645_v52 = vpop.xlane.xlu0 %1644 }
 0x52a   :  { %2464 = vrcp.f32 %v1645_v52 }
 0x52b   :  { %v1647_v51 = vpop.xlane.xlu1 %1646 }
 0x52c   :  { %v2461_v59 = vpop.eup %2460  ;;  %2466 = vrcp.f32 %v1647_v51 }
 0x52d   :  { %v1708_v46 = vmul.f32 %v2461_v59, %v3471_v25 }
 0x52e   :  { %v2463_v13 = vpop.eup %2462 }
 0x52f   :  { %1740 = vst [vmem:[#allocation8 + $0xe0] sm:$0xff] %v1708_v46  ;;  %v1709_v18 = vmul.f32 %v2463_v13, %v3474_v2 }
 0x531   :  { %1741 = vst [vmem:[#allocation8 + $0xe8] sm:$0xff] %v1709_v18 }
 0x534   :  { %v2465_v20 = vpop.eup %2464 }
 0x535   :  { %v1710_v0 = vmul.f32 %v2465_v20, %v3477_v23 }
 0x536   :  { %v2467_v24 = vpop.eup %2466 }
 0x537   :  { %1742 = vst [vmem:[#allocation8 + $0xf0] sm:$0xff] %v1710_v0  ;;  %v1711_v14 = vmul.f32 %v2467_v24, %v3480_v12 }
 0x539   :  { %1743 = vst [vmem:[#allocation8 + $0xf8] sm:$0xff] %v1711_v14 }
 0x53a   :  { %2578 = shalt.err (!%p2575_p0)
}
 0x53b   :  { %s2579_s14 = scalar_lea.hbm %s3535_s5, 4096 }
 0x53c   :  { %p2580_p1 = scmp.ne.s32.totalorder %s3535_s5, %s2579_s14  ;;  %p2583_p2 = scmp.lt.u32.totalorder %s2579_s14, %s3535_s5 }
 0x53e   :  { %p2585_p3 = pnand %p2583_p2, %p2580_p1 }
 0x540   :  { %2588 = shalt.err (!%p2585_p3)
}
 0x541   :  { %1755 = dma.vmem_to_hbm [thread:$0]  %s1750_s10, 4096, %s3535_s5, [#allocation4], %s2599_s1, %s2599_s1, %s2600_s17  }
 0x542   :  { %2593 = dma.done.wait [#allocation4], 4096  }
 0x543   :  { %2594 = vsyncadd [#allocation4], 4294963200 }
 0x544   :  { %1759 = vsyncpa [#allocation3], 1 }
 0x545   :  { %1760 = vsyncpa [#allocation6], 1 }
 0x546   :  { %1761 = vsyncpa [#allocation4], 1 }

</bundles_post_ra>
